<compile_context>
chip_gen: v6e
topology: v6e:2x2x1
jax: 0.10.0
libtpu: 0.0.40
codegen_flags: <defaults>
</compile_context>

<pallas_src>
import functools

import jax
import jax.numpy as jnp
from jax.experimental import pallas as pl
from jax.experimental.pallas import tpu as pltpu

EPS = 1e-6   # norm_layer = partial(nn.LayerNorm, eps=1e-6)


def _round_up(x, m):
    return ((x + m - 1) // m) * m


@functools.lru_cache(maxsize=None)
def _vmem_capacity_bytes():
    try:
        return int(pltpu.get_tpu_info().vmem_capacity_bytes)
    except Exception:
        return 64 * 1024 * 1024


def _vmem_limit_bytes():
    return int(_vmem_capacity_bytes() * 3 // 4)


def _default_row_tile():
    # 128 MiB chips (v5e/v6e) comfortably fit 512-row blocks of the MLP
    # kernel (bigger blocks amortize per-grid-step overhead); stay at 256 on
    # 64 MiB v7x.
    return 512 if _vmem_capacity_bytes() >= 100 * 1024 * 1024 else 256


def _pad_tokens(n):
    return _round_up(n, 128) if n >= 128 else _round_up(n, 8)


# ---------------------------------------------------------------------------
# math helpers (used both inside kernels and in the pure-JAX reference)
# ---------------------------------------------------------------------------
def _gelu_exact(x):
    # exact (erf) GELU, matching torch.nn.GELU() default
    return 0.5 * x * (1.0 + jax.lax.erf(x * (1.0 / jnp.sqrt(2.0))))


def _layernorm(x, g, b, eps=EPS):
    mu = jnp.mean(x, axis=-1, keepdims=True)
    var = jnp.mean(jnp.square(x - mu), axis=-1, keepdims=True)
    return (x - mu) * jax.lax.rsqrt(var + eps) * g + b


# ---------------------------------------------------------------------------
# Pallas kernels
# ---------------------------------------------------------------------------
def linear_kernel(x_ref, w_ref, b_ref, o_ref):
    # x: (TM, K) f32, w: (K, N) bf16, b: (1, N) f32
    x = x_ref[...].astype(jnp.bfloat16)
    o_ref[...] = (
        jnp.dot(x, w_ref[...], preferred_element_type=jnp.float32) + b_ref[...]
    )


def ln_linear_kernel(x_ref, g_ref, b_ref, w_ref, bias_ref, o_ref):
    # LayerNorm (f32) followed by an MXU matmul (bf16 operands, f32 acc).
    h = _layernorm(x_ref[...], g_ref[...], b_ref[...]).astype(jnp.bfloat16)
    o_ref[...] = (
        jnp.dot(h, w_ref[...], preferred_element_type=jnp.float32) + bias_ref[...]
    )


def attn_block_kernel(x_ref, g1_ref, b1_ref, wq_ref, wk_ref, wv_ref,
                      bq_ref, bk_ref, bv_ref, wproj_ref, bproj_ref,
                      o_ref, xn_scr, acc_scr, *, n_valid):
    """Fused LN1 + QKV + softmax attention + output proj + residual.

    Grid is (B, H); the head axis is a reduction: acc_scr accumulates
    o_h @ Wproj[h] across heads, the residual is added at the last head.
    x/out blocks are (1, Npad, E) and resident across the head axis.
    The qk scale is pre-folded into wq/bq.
    """
    h = pl.program_id(1)

    @pl.when(h == 0)
    def _():
        # LN1 computed once per batch element, cached in VMEM for all heads.
        xn_scr[...] = _layernorm(x_ref[0], g1_ref[...], b1_ref[...]
                                 ).astype(jnp.bfloat16)
        acc_scr[...] = jnp.zeros_like(acc_scr)

    xn = xn_scr[...]                                               # (Np, E) bf16
    q = jnp.dot(xn, wq_ref[0], preferred_element_type=jnp.float32) + bq_ref[0]
    k = jnp.dot(xn, wk_ref[0], preferred_element_type=jnp.float32) + bk_ref[0]
    v = jnp.dot(xn, wv_ref[0], preferred_element_type=jnp.float32) + bv_ref[0]

    # Scores (scale already folded into q).  MXU contraction depth is only
    # head_dim here; that's expected -- the dense QKV/proj/MLP matmuls carry
    # the FLOPs.
    s = jax.lax.dot_general(
        q.astype(jnp.bfloat16), k.astype(jnp.bfloat16),
        (((1,), (1,)), ((), ())),
        preferred_element_type=jnp.float32)                        # (Np, Np)

    n_pad = s.shape[-1]
    if n_pad > n_valid:  # static: mask padded key columns before softmax
        key_idx = jax.lax.broadcasted_iota(jnp.int32, s.shape, 1)
        s = jnp.where(key_idx < n_valid, s, -1e30)

    s = s - jnp.max(s, axis=-1, keepdims=True)
    p = jnp.exp(s)
    inv = pl.reciprocal(jnp.sum(p, axis=-1, keepdims=True), approx=True)
    # Deferred normalization: scale the (Np, D) result, not the (Np, Np) probs.
    o_h = jnp.dot(p.astype(jnp.bfloat16), v.astype(jnp.bfloat16),
                  preferred_element_type=jnp.float32) * inv        # (Np, D)

    # Fused output projection: accumulate this head's contribution.
    acc_scr[...] += jnp.dot(o_h.astype(jnp.bfloat16), wproj_ref[0],
                            preferred_element_type=jnp.float32)

    @pl.when(h == pl.num_programs(1) - 1)
    def _():
        o_ref[0] = x_ref[0] + acc_scr[...] + bproj_ref[...]

    # TODO(synk): for very long sequences (N >~ 1.5k on v7x's 64 MiB VMEM) add
    # a KV-tile / online-softmax loop instead of holding the full (Np, Np)
    # score matrix.


def ln_mlp_kernel(y_ref, g2_ref, b2_ref, w1_ref, bm1_ref, w2_ref, bm2_ref,
                  o_ref):
    # LN2 + MLP(GELU) + residual, tiled over token rows.
    y = y_ref[...]
    h = _layernorm(y, g2_ref[...], b2_ref[...]).astype(jnp.bfloat16)
    h = jnp.dot(h, w1_ref[...], preferred_element_type=jnp.float32) + bm1_ref[...]
    h = _gelu_exact(h).astype(jnp.bfloat16)
    o_ref[...] = (
        y + jnp.dot(h, w2_ref[...], preferred_element_type=jnp.float32)
        + bm2_ref[...]
    )
    # TODO(synk): on v7x with ViT-L/H weights, single-buffer the resident
    # weight specs (pipeline_mode=pl.Buffered(1)) or tile the hidden dim.


# ---------------------------------------------------------------------------
# Pallas wrappers
# ---------------------------------------------------------------------------
def _row_tiled_call(kernel, tiled_inputs, full_inputs, out_cols,
                    out_dtype=jnp.float32, row_tile=None):
    """Run `kernel` on row-tiles of the 2-D `tiled_inputs` (grid over rows)."""
    if row_tile is None:
        row_tile = _default_row_tile()
    M = tiled_inputs[0].shape[0]
    if M <= row_tile:
        tm, Mp = M, M                      # single full-extent block
    else:
        tm = row_tile
        Mp = _round_up(M, tm)
    if Mp != M:
        tiled_inputs = [jnp.pad(a, ((0, Mp - M), (0, 0))) for a in tiled_inputs]

    in_specs = [pl.BlockSpec((tm, a.shape[1]), lambda i: (i, 0))
                for a in tiled_inputs]
    in_specs += [pl.BlockSpec(a.shape, lambda i, nd=a.ndim: (0,) * nd)
                 for a in full_inputs]

    out = pl.pallas_call(
        kernel,
        grid=(Mp // tm,),
        in_specs=in_specs,
        out_specs=pl.BlockSpec((tm, out_cols), lambda i: (i, 0)),
        out_shape=jax.ShapeDtypeStruct((Mp, out_cols), out_dtype),
        compiler_params=pltpu.CompilerParams(
            dimension_semantics=("parallel",),
            vmem_limit_bytes=_vmem_limit_bytes()),
    )(*tiled_inputs, *full_inputs)
    return out[:M] if Mp != M else out


def pallas_attn_block(t, bp, num_heads, head_dim, n_valid):
    """Fused attention residual block.  t: (B, Npad, E) f32 residual stream."""
    B, Np, E = t.shape
    D = head_dim
    kern = functools.partial(attn_block_kernel, n_valid=n_valid)
    head_spec = lambda shape: pl.BlockSpec(shape, lambda b, h: (h, 0, 0))
    return pl.pallas_call(
        kern,
        grid=(B, num_heads),
        in_specs=[
            pl.BlockSpec((1, Np, E), lambda b, h: (b, 0, 0)),   # x (resident)
            pl.BlockSpec((1, E), lambda b, h: (0, 0)),          # g1
            pl.BlockSpec((1, E), lambda b, h: (0, 0)),          # b1
            head_spec((1, E, D)),                               # wq (scaled)
            head_spec((1, E, D)),                               # wk
            head_spec((1, E, D)),                               # wv
            head_spec((1, 1, D)),                               # bq (scaled)
            head_spec((1, 1, D)),                               # bk
            head_spec((1, 1, D)),                               # bv
            head_spec((1, D, E)),                               # wproj rows
            pl.BlockSpec((1, E), lambda b, h: (0, 0)),          # bproj
        ],
        out_specs=pl.BlockSpec((1, Np, E), lambda b, h: (b, 0, 0)),
        out_shape=jax.ShapeDtypeStruct((B, Np, E), jnp.float32),
        scratch_shapes=[pltpu.VMEM((Np, E), jnp.bfloat16),      # cached LN1(x)
                        pltpu.VMEM((Np, E), jnp.float32)],      # proj accumulator
        compiler_params=pltpu.CompilerParams(
            dimension_semantics=("parallel", "arbitrary"),
            vmem_limit_bytes=_vmem_limit_bytes()),
    )(t, bp["g1"], bp["b1"], bp["wq"], bp["wk"], bp["wv"],
      bp["bq"], bp["bk"], bp["bv"], bp["wproj"], bp["bproj"])


# ---------------------------------------------------------------------------
# parameter preparation: bf16 weights, head-major qkv split, scale folding,
# padded classification head
# ---------------------------------------------------------------------------
def prepare_params(params, cfg):
    E = cfg["embed_dim"]
    H = cfg["num_heads"]
    D = E // H
    scale = float(D ** -0.5)
    bf = lambda a: a.astype(jnp.bfloat16)

    nc = cfg["num_classes"]
    ncp = _round_up(nc, 128)
    wh, bh = params["wh"], params["bh"]
    if ncp != nc:   # lane-dense head output; sliced back wrapper-side
        wh = jnp.pad(wh, ((0, 0), (0, ncp - nc)))
        bh = jnp.pad(bh, ((0, 0), (0, ncp - nc)))

    dp = {
        "wp": bf(params["wp"]), "bp": params["bp"],
        "cls": params["cls"], "pos": params["pos"],
        "gn": params["gn"], "bn": params["bn"],
        "wh": bf(wh), "bh": bh,
        "blocks": [],
    }
    for blk in params["blocks"]:
        # split the fused qkv weight into per-head q/k/v weights (H, E, D),
        # folding the qk scale into the q weights/bias.
        w = blk["wqkv"].reshape(E, 3, H, D)
        wq = jnp.transpose(w[:, 0] * scale, (1, 0, 2))   # (H, E, D)
        wk = jnp.transpose(w[:, 1], (1, 0, 2))
        wv = jnp.transpose(w[:, 2], (1, 0, 2))
        b = blk["bqkv"].reshape(3, H, D)
        bq = (b[0] * scale).reshape(H, 1, D)
        bk = b[1].reshape(H, 1, D)
        bv = b[2].reshape(H, 1, D)
        dp["blocks"].append({
            "g1": blk["g1"], "b1": blk["b1"],
            "wq": bf(wq), "wk": bf(wk), "wv": bf(wv),
            "bq": bq, "bk": bk, "bv": bv,
            "wproj": bf(blk["wproj"].reshape(H, D, E)), "bproj": blk["bproj"],
            "g2": blk["g2"], "b2": blk["b2"],
            "w1": bf(blk["w1"]), "bm1": blk["bm1"],
            "w2": bf(blk["w2"]), "bm2": blk["bm2"],
        })
    return dp


# ---------------------------------------------------------------------------
# glue: patch extraction + full forward
# ---------------------------------------------------------------------------
def extract_patches(x_nchw, patch):
    # TODO(synk): fuse the patch space-to-depth into the patch-embed kernel
    # (needs an Element-indexed BlockSpec over (B, Gh, Gw)); left to XLA here.
    B, C, H, W = x_nchw.shape
    Gh, Gw = H // patch, W // patch
    p = x_nchw.reshape(B, C, Gh, patch, Gw, patch)
    p = p.transpose(0, 2, 4, 1, 3, 5)
    return p.reshape(B, Gh * Gw, C * patch * patch)


def vit_forward_pallas(x_nchw, params, cfg):
    dp = prepare_params(params, cfg)
    B = x_nchw.shape[0]
    E = cfg["embed_dim"]
    H = cfg["num_heads"]
    D = E // H

    patches = extract_patches(x_nchw, cfg["patch_size"])          # (B, np, K)
    np_, K = patches.shape[1], patches.shape[2]

    emb = _row_tiled_call(linear_kernel, [patches.reshape(B * np_, K)],
                          [dp["wp"], dp["bp"]], E)
    emb = emb.reshape(B, np_, E)

    cls = jnp.broadcast_to(dp["cls"], (B, 1, E))
    t = jnp.concatenate([cls, emb], axis=1) + dp["pos"]           # (B, N, E)
    N = t.shape[1]
    Np = _pad_tokens(N)
    if Np != N:
        # padded token rows start at zero; padded KEY columns are masked to
        # -inf in the attention kernel, padded query rows are never read.
        t = jnp.pad(t, ((0, 0), (0, Np - N), (0, 0)))

    for bp in dp["blocks"]:
        # attention sub-block (LN1+QKV+attn+proj+residual), fused in one call
        t = pallas_attn_block(t, bp, H, D, n_valid=N)             # (B, Np, E)
        # MLP sub-block (LN2+fc1+GELU+fc2+residual), row-tiled
        y = _row_tiled_call(
            ln_mlp_kernel, [t.reshape(B * Np, E)],
            [bp["g2"], bp["b2"], bp["w1"], bp["bm1"], bp["w2"], bp["bm2"]], E)
        t = y.reshape(B, Np, E)

    # final LayerNorm + classification head, on the CLS rows only (LayerNorm
    # is row-wise, so this matches applying it to all tokens then slicing).
    cls_out = t[:, 0]                                              # (B, E)
    logits = _row_tiled_call(ln_linear_kernel, [cls_out],
                             [dp["gn"], dp["bn"], dp["wh"], dp["bh"]],
                             dp["wh"].shape[1])
    return logits[:, :cfg["num_classes"]]


# ---------------------------------------------------------------------------
# pure-JAX f32 reference (for verification)
# ---------------------------------------------------------------------------
def _ref_block(x, p, num_heads):
    B, N, C = x.shape
    D = C // num_heads
    scale = D ** -0.5
    h = _layernorm(x, p["g1"], p["b1"])
    qkv = h @ p["wqkv"] + p["bqkv"]
    qkv = qkv.reshape(B, N, 3, num_heads, D).transpose(2, 0, 3, 1, 4)
    q, k, v = qkv[0], qkv[1], qkv[2]                  # (B, H, N, D)
    attn = (q @ jnp.swapaxes(k, -2, -1)) * scale
    attn = jax.nn.softmax(attn, axis=-1)
    out = (attn @ v).transpose(0, 2, 1, 3).reshape(B, N, C)
    out = out @ p["wproj"] + p["bproj"]
    x = x + out
    h = _layernorm(x, p["g2"], p["b2"])
    h = jax.nn.gelu(h @ p["w1"] + p["bm1"], approximate=False)
    h = h @ p["w2"] + p["bm2"]
    return x + h


def vit_forward_ref(x_nchw, params, cfg):
    B = x_nchw.shape[0]
    E = cfg["embed_dim"]
    patches = extract_patches(x_nchw, cfg["patch_size"])
    emb = patches @ params["wp"] + params["bp"]
    cls = jnp.broadcast_to(params["cls"], (B, 1, E))
    t = jnp.concatenate([cls, emb], axis=1) + params["pos"]
    for bp in params["blocks"]:
        t = _ref_block(t, bp, cfg["num_heads"])
    t = _layernorm(t, params["gn"], params["bn"])
    return t[:, 0] @ params["wh"] + params["bh"]


# ---------------------------------------------------------------------------
# deterministic synthetic parameter init (shapes follow the torch __init__)
# ---------------------------------------------------------------------------
def init_params(key, cfg):
    E = cfg["embed_dim"]
    P = cfg["patch_size"]
    K = cfg["in_c"] * P * P
    Hm = int(E * cfg["mlp_ratio"])
    np_ = (cfg["img_size"] // P) ** 2
    N = np_ + 1

    def trunc(k, shape, std):
        return std * jax.random.truncated_normal(k, -2.0, 2.0, shape, jnp.float32)

    keys = jax.random.split(key, 8 + 4 * cfg["depth"])
    ki = iter(range(len(keys)))

    params = {
        "wp": jax.random.normal(keys[next(ki)], (K, E), jnp.float32)
        * jnp.sqrt(2.0 / E),
        "bp": jnp.zeros((1, E), jnp.float32),
        "cls": trunc(keys[next(ki)], (1, 1, E), 0.02),
        "pos": trunc(keys[next(ki)], (1, N, E), 0.02),
        "gn": jnp.ones((1, E), jnp.float32),
        "bn": jnp.zeros((1, E), jnp.float32),
        "wh": trunc(keys[next(ki)], (E, cfg["num_classes"]), 0.01),
        "bh": jnp.zeros((1, cfg["num_classes"]), jnp.float32),
        "blocks": [],
    }
    for _ in range(cfg["depth"]):
        blk = {
            "g1": jnp.ones((1, E), jnp.float32),
            "b1": jnp.zeros((1, E), jnp.float32),
            "wqkv": trunc(keys[next(ki)], (E, 3 * E), 0.01),
            "bqkv": jnp.zeros((1, 3 * E), jnp.float32),   # qkv_bias=True, zero-init
            "wproj": trunc(keys[next(ki)], (E, E), 0.01),
            "bproj": jnp.zeros((1, E), jnp.float32),
            "g2": jnp.ones((1, E), jnp.float32),
            "b2": jnp.zeros((1, E), jnp.float32),
            "w1": trunc(keys[next(ki)], (E, Hm), 0.01),
            "bm1": jnp.zeros((1, Hm), jnp.float32),
            "w2": trunc(keys[next(ki)], (Hm, E), 0.01),
            "bm2": jnp.zeros((1, E), jnp.float32),
        }
        params["blocks"].append(blk)
    return params


# ---------------------------------------------------------------------------
if __name__ == "__main__":
    cfg = dict(
        img_size=16,
        patch_size=4,
        in_c=4,
        embed_dim=32,
        depth=2,
        num_heads=4,
        mlp_ratio=4.0,
        num_classes=10,
    )
    root = jax.random.PRNGKey(0)
    kx, kp = jax.random.split(root)
    x = jax.random.normal(kx, (2, cfg["in_c"], cfg["img_size"], cfg["img_size"]),
                          jnp.float32)
    params = init_params(kp, cfg)

    fwd = jax.jit(functools.partial(vit_forward_pallas, cfg=cfg))
    out = jax.block_until_ready(fwd(x, params))

    ref = vit_forward_ref(x, params, cfg)
    assert out.shape == (2, cfg["num_classes"])
    # bf16 MXU operands + approximate reciprocal => looser tolerance vs f32 ref
    max_err = float(jnp.max(jnp.abs(out - ref)))
    assert bool(jnp.allclose(out, ref, atol=1e-2, rtol=1e-1)), max_err
    print("KERNEL_OK")
</pallas_src>

<mosaic_0001>
module attributes {stable_mosaic.version = 11 : i64} {
  func.func @linear_kernel(%arg0: i32, %arg1: memref<32x64xf32, #tpu.memory_space<vmem>>, %arg2: memref<64x32xbf16, #tpu.memory_space<vmem>>, %arg3: memref<1x32xf32, #tpu.memory_space<vmem>>, %arg4: memref<32x32xf32, #tpu.memory_space<vmem>>) attributes {dimension_semantics = [#tpu.dimension_semantics<parallel>], iteration_bounds = array<i64: 1>, scalar_prefetch = 0 : i64, scratch_operands = 0 : i64, tpu.core_type = #tpu.core_type<tc>, window_params = [{transform_indices = @transform_0, window_bounds = array<i64: 32, 64>}, {pipeline_mode = #tpu.pipeline_mode<synchronous>, transform_indices = @transform_1, window_bounds = array<i64: 64, 32>}, {pipeline_mode = #tpu.pipeline_mode<synchronous>, transform_indices = @transform_2, window_bounds = array<i64: 1, 32>}, {transform_indices = @transform_3, window_bounds = array<i64: 32, 32>}]} {
    %c0 = arith.constant 0 : index
    %c0_0 = arith.constant 0 : index
    %0 = vector.load %arg1[%c0, %c0_0] : memref<32x64xf32, #tpu.memory_space<vmem>>, vector<32x64xf32>
    %1 = arith.truncf %0 : vector<32x64xf32> to vector<32x64xbf16>
    %c0_1 = arith.constant 0 : index
    %c0_2 = arith.constant 0 : index
    %2 = vector.load %arg2[%c0_1, %c0_2] : memref<64x32xbf16, #tpu.memory_space<vmem>>, vector<64x32xbf16>
    %cst = arith.constant dense<0.000000e+00> : vector<32x32xf32>
    %3 = tpu.matmul %1, %2, %cst {dimension_numbers = #tpu.dot_dimension_numbers<[1], [0], [0], [1], [0, 0, 1, 1], [], []>} : vector<32x64xbf16>, vector<64x32xbf16>, vector<32x32xf32> -> vector<32x32xf32>
    %c0_3 = arith.constant 0 : index
    %c0_4 = arith.constant 0 : index
    %4 = vector.load %arg3[%c0_3, %c0_4] : memref<1x32xf32, #tpu.memory_space<vmem>>, vector<1x32xf32>
    %5 = vector.broadcast %4 : vector<1x32xf32> to vector<32x32xf32>
    %6 = arith.addf %3, %5 : vector<32x32xf32>
    %c0_5 = arith.constant 0 : index
    %c0_6 = arith.constant 0 : index
    %7 = vector.load %arg4[%c0_5, %c0_6] : memref<32x32xf32, #tpu.memory_space<vmem>>, vector<32x32xf32>
    tpu.vector_store %arg4[%c0_5, %c0_6], %6 {strides = array<i32>} : memref<32x32xf32, #tpu.memory_space<vmem>>, vector<32x32xf32>,
    return
  }
  func.func @transform_0(%arg0: i32) -> (i32, i32) {
    %c0_i32 = arith.constant 0 : i32
    %c0_i32_0 = arith.constant 0 : i32
    return %arg0, %c0_i32 : i32, i32
  }
  func.func @transform_1(%arg0: i32) -> (i32, i32) {
    %c0_i32 = arith.constant 0 : i32
    %c0_i32_0 = arith.constant 0 : i32
    %c0_i32_1 = arith.constant 0 : i32
    return %c0_i32, %c0_i32_0 : i32, i32
  }
  func.func @transform_2(%arg0: i32) -> (i32, i32) {
    %c0_i32 = arith.constant 0 : i32
    %c0_i32_0 = arith.constant 0 : i32
    %c0_i32_1 = arith.constant 0 : i32
    return %c0_i32, %c0_i32_0 : i32, i32
  }
  func.func @transform_3(%arg0: i32) -> (i32, i32) {
    %c0_i32 = arith.constant 0 : i32
    %c0_i32_0 = arith.constant 0 : i32
    return %arg0, %c0_i32 : i32, i32
  }
}

module attributes {stable_mosaic.version = 11 : i64} {
  func.func @attn_block_kernel(%arg0: i32, %arg1: i32, %arg2: memref<1x24x32xf32, #tpu.memory_space<vmem>>, %arg3: memref<1x32xf32, #tpu.memory_space<vmem>>, %arg4: memref<1x32xf32, #tpu.memory_space<vmem>>, %arg5: memref<1x32x8xbf16, #tpu.memory_space<vmem>>, %arg6: memref<1x32x8xbf16, #tpu.memory_space<vmem>>, %arg7: memref<1x32x8xbf16, #tpu.memory_space<vmem>>, %arg8: memref<1x1x8xf32, #tpu.memory_space<vmem>>, %arg9: memref<1x1x8xf32, #tpu.memory_space<vmem>>, %arg10: memref<1x1x8xf32, #tpu.memory_space<vmem>>, %arg11: memref<1x8x32xbf16, #tpu.memory_space<vmem>>, %arg12: memref<1x32xf32, #tpu.memory_space<vmem>>, %arg13: memref<1x24x32xf32, #tpu.memory_space<vmem>>, %arg14: memref<24x32xbf16, #tpu.memory_space<vmem>>, %arg15: memref<24x32xf32, #tpu.memory_space<vmem>>) attributes {dimension_semantics = [#tpu.dimension_semantics<parallel>, #tpu.dimension_semantics<arbitrary>], iteration_bounds = array<i64: 2, 4>, scalar_prefetch = 0 : i64, scratch_operands = 2 : i64, tpu.core_type = #tpu.core_type<tc>, window_params = [{transform_indices = @transform_0, window_bounds = array<i64: 1, 24, 32>}, {pipeline_mode = #tpu.pipeline_mode<synchronous>, transform_indices = @transform_1, window_bounds = array<i64: 1, 32>}, {pipeline_mode = #tpu.pipeline_mode<synchronous>, transform_indices = @transform_2, window_bounds = array<i64: 1, 32>}, {transform_indices = @transform_3, window_bounds = array<i64: 1, 32, 8>}, {transform_indices = @transform_4, window_bounds = array<i64: 1, 32, 8>}, {transform_indices = @transform_5, window_bounds = array<i64: 1, 32, 8>}, {transform_indices = @transform_6, window_bounds = array<i64: 1, 1, 8>}, {transform_indices = @transform_7, window_bounds = array<i64: 1, 1, 8>}, {transform_indices = @transform_8, window_bounds = array<i64: 1, 1, 8>}, {transform_indices = @transform_9, window_bounds = array<i64: 1, 8, 32>}, {pipeline_mode = #tpu.pipeline_mode<synchronous>, transform_indices = @transform_10, window_bounds = array<i64: 1, 32>}, {transform_indices = @transform_11, window_bounds = array<i64: 1, 24, 32>}]} {
    %c0_i32 = arith.constant 0 : i32
    %0 = arith.cmpi eq, %arg1, %c0_i32 : i32
    %1 = arith.extui %0 : i1 to i32
    %c0_i32_0 = arith.constant 0 : i32
    %2 = arith.cmpi ne, %1, %c0_i32_0 : i32
    scf.if %2 {
      %c0_36 = arith.constant 0 : index
      %c0_37 = arith.constant 0 : index
      %c0_38 = arith.constant 0 : index
      %56 = vector.load %arg2[%c0_36, %c0_37, %c0_38] : memref<1x24x32xf32, #tpu.memory_space<vmem>>, vector<1x24x32xf32>
      %57 = vector.shape_cast %56 : vector<1x24x32xf32> to vector<24x32xf32>
      %c0_39 = arith.constant 0 : index
      %c0_40 = arith.constant 0 : index
      %58 = vector.load %arg3[%c0_39, %c0_40] : memref<1x32xf32, #tpu.memory_space<vmem>>, vector<1x32xf32>
      %c0_41 = arith.constant 0 : index
      %c0_42 = arith.constant 0 : index
      %59 = vector.load %arg4[%c0_41, %c0_42] : memref<1x32xf32, #tpu.memory_space<vmem>>, vector<1x32xf32>
      %cst_43 = arith.constant dense<0.000000e+00> : vector<24xf32>
      %60 = vector.multi_reduction <add>, %57, %cst_43 [1] : vector<24x32xf32> to vector<24xf32>
      %61 = vector.shape_cast %60 : vector<24xf32> to vector<24x1xf32>
      %cst_44 = arith.constant 3.200000e+01 : f32
      %62 = vector.broadcast %cst_44 : f32 to vector<24x1xf32>
      %63 = arith.divf %61, %62 : vector<24x1xf32>
      %64 = vector.broadcast %63 : vector<24x1xf32> to vector<24x32xf32>
      %65 = arith.subf %57, %64 : vector<24x32xf32>
      %66 = arith.mulf %65, %65 : vector<24x32xf32>
      %cst_45 = arith.constant dense<0.000000e+00> : vector<24xf32>
      %67 = vector.multi_reduction <add>, %66, %cst_45 [1] : vector<24x32xf32> to vector<24xf32>
      %68 = vector.shape_cast %67 : vector<24xf32> to vector<24x1xf32>
      %cst_46 = arith.constant 3.200000e+01 : f32
      %69 = vector.broadcast %cst_46 : f32 to vector<24x1xf32>
      %70 = arith.divf %68, %69 : vector<24x1xf32>
      %71 = vector.broadcast %63 : vector<24x1xf32> to vector<24x32xf32>
      %72 = arith.subf %57, %71 : vector<24x32xf32>
      %cst_47 = arith.constant 9.99999997E-7 : f32
      %73 = vector.broadcast %cst_47 : f32 to vector<24x1xf32>
      %74 = arith.addf %70, %73 : vector<24x1xf32>
      %75 = math.rsqrt %74 : vector<24x1xf32>
      %76 = vector.broadcast %75 : vector<24x1xf32> to vector<24x32xf32>
      %77 = arith.mulf %72, %76 : vector<24x32xf32>
      %78 = vector.broadcast %58 : vector<1x32xf32> to vector<24x32xf32>
      %79 = arith.mulf %77, %78 : vector<24x32xf32>
      %80 = vector.broadcast %59 : vector<1x32xf32> to vector<24x32xf32>
      %81 = arith.addf %79, %80 : vector<24x32xf32>
      %82 = arith.truncf %81 : vector<24x32xf32> to vector<24x32xbf16>
      %c0_48 = arith.constant 0 : index
      %c0_49 = arith.constant 0 : index
      %83 = vector.load %arg14[%c0_48, %c0_49] : memref<24x32xbf16, #tpu.memory_space<vmem>>, vector<24x32xbf16>
      tpu.vector_store %arg14[%c0_48, %c0_49], %82 {strides = array<i32>} : memref<24x32xbf16, #tpu.memory_space<vmem>>, vector<24x32xbf16>,
      %cst_50 = arith.constant 0.000000e+00 : f32
      %84 = vector.broadcast %cst_50 : f32 to vector<24x32xf32>
      %c0_51 = arith.constant 0 : index
      %c0_52 = arith.constant 0 : index
      %85 = vector.load %arg15[%c0_51, %c0_52] : memref<24x32xf32, #tpu.memory_space<vmem>>, vector<24x32xf32>
      tpu.vector_store %arg15[%c0_51, %c0_52], %84 {strides = array<i32>} : memref<24x32xf32, #tpu.memory_space<vmem>>, vector<24x32xf32>,
    } else {
    }
    %c0 = arith.constant 0 : index
    %c0_1 = arith.constant 0 : index
    %3 = vector.load %arg14[%c0, %c0_1] : memref<24x32xbf16, #tpu.memory_space<vmem>>, vector<24x32xbf16>
    %c0_2 = arith.constant 0 : index
    %c0_3 = arith.constant 0 : index
    %c0_4 = arith.constant 0 : index
    %4 = vector.load %arg5[%c0_2, %c0_3, %c0_4] : memref<1x32x8xbf16, #tpu.memory_space<vmem>>, vector<1x32x8xbf16>
    %5 = vector.shape_cast %4 : vector<1x32x8xbf16> to vector<32x8xbf16>
    %cst = arith.constant dense<0.000000e+00> : vector<24x8xf32>
    %6 = tpu.matmul %3, %5, %cst {dimension_numbers = #tpu.dot_dimension_numbers<[1], [0], [0], [1], [0, 0, 1, 1], [], []>} : vector<24x32xbf16>, vector<32x8xbf16>, vector<24x8xf32> -> vector<24x8xf32>
    %c0_5 = arith.constant 0 : index
    %c0_6 = arith.constant 0 : index
    %c0_7 = arith.constant 0 : index
    %7 = vector.load %arg8[%c0_5, %c0_6, %c0_7] : memref<1x1x8xf32, #tpu.memory_space<vmem>>, vector<1x1x8xf32>
    %8 = vector.shape_cast %7 : vector<1x1x8xf32> to vector<1x8xf32>
    %9 = vector.broadcast %8 : vector<1x8xf32> to vector<24x8xf32>
    %10 = arith.addf %6, %9 : vector<24x8xf32>
    %c0_8 = arith.constant 0 : index
    %c0_9 = arith.constant 0 : index
    %c0_10 = arith.constant 0 : index
    %11 = vector.load %arg6[%c0_8, %c0_9, %c0_10] : memref<1x32x8xbf16, #tpu.memory_space<vmem>>, vector<1x32x8xbf16>
    %12 = vector.shape_cast %11 : vector<1x32x8xbf16> to vector<32x8xbf16>
    %cst_11 = arith.constant dense<0.000000e+00> : vector<24x8xf32>
    %13 = tpu.matmul %3, %12, %cst_11 {dimension_numbers = #tpu.dot_dimension_numbers<[1], [0], [0], [1], [0, 0, 1, 1], [], []>} : vector<24x32xbf16>, vector<32x8xbf16>, vector<24x8xf32> -> vector<24x8xf32>
    %c0_12 = arith.constant 0 : index
    %c0_13 = arith.constant 0 : index
    %c0_14 = arith.constant 0 : index
    %14 = vector.load %arg9[%c0_12, %c0_13, %c0_14] : memref<1x1x8xf32, #tpu.memory_space<vmem>>, vector<1x1x8xf32>
    %15 = vector.shape_cast %14 : vector<1x1x8xf32> to vector<1x8xf32>
    %16 = vector.broadcast %15 : vector<1x8xf32> to vector<24x8xf32>
    %17 = arith.addf %13, %16 : vector<24x8xf32>
    %c0_15 = arith.constant 0 : index
    %c0_16 = arith.constant 0 : index
    %c0_17 = arith.constant 0 : index
    %18 = vector.load %arg7[%c0_15, %c0_16, %c0_17] : memref<1x32x8xbf16, #tpu.memory_space<vmem>>, vector<1x32x8xbf16>
    %19 = vector.shape_cast %18 : vector<1x32x8xbf16> to vector<32x8xbf16>
    %cst_18 = arith.constant dense<0.000000e+00> : vector<24x8xf32>
    %20 = tpu.matmul %3, %19, %cst_18 {dimension_numbers = #tpu.dot_dimension_numbers<[1], [0], [0], [1], [0, 0, 1, 1], [], []>} : vector<24x32xbf16>, vector<32x8xbf16>, vector<24x8xf32> -> vector<24x8xf32>
    %c0_19 = arith.constant 0 : index
    %c0_20 = arith.constant 0 : index
    %c0_21 = arith.constant 0 : index
    %21 = vector.load %arg10[%c0_19, %c0_20, %c0_21] : memref<1x1x8xf32, #tpu.memory_space<vmem>>, vector<1x1x8xf32>
    %22 = vector.shape_cast %21 : vector<1x1x8xf32> to vector<1x8xf32>
    %23 = vector.broadcast %22 : vector<1x8xf32> to vector<24x8xf32>
    %24 = arith.addf %20, %23 : vector<24x8xf32>
    %25 = arith.truncf %10 : vector<24x8xf32> to vector<24x8xbf16>
    %26 = arith.truncf %17 : vector<24x8xf32> to vector<24x8xbf16>
    %cst_22 = arith.constant dense<0.000000e+00> : vector<24x24xf32>
    %27 = tpu.matmul %25, %26, %cst_22 {dimension_numbers = #tpu.dot_dimension_numbers<[1], [1], [0], [0], [0, 0, 1, 0], [], []>} : vector<24x8xbf16>, vector<24x8xbf16>, vector<24x24xf32> -> vector<24x24xf32>
    %28 = tpu.iota {dimensions = array<i32: 1>} : vector<24x24xi32>
    %c17_i32 = arith.constant 17 : i32
    %29 = vector.broadcast %c17_i32 : i32 to vector<24x24xi32>
    %30 = arith.cmpi slt, %28, %29 : vector<24x24xi32>
    %cst_23 = arith.constant -1.000000e+30 : f32
    %31 = vector.broadcast %cst_23 : f32 to vector<24x24xf32>
    %32 = arith.select %30, %27, %31 : vector<24x24xi1>, vector<24x24xf32>
    %cst_24 = arith.constant dense<0xFF800000> : vector<24xf32>
    %33 = vector.multi_reduction <maximumf>, %32, %cst_24 [1] : vector<24x24xf32> to vector<24xf32>
    %34 = vector.shape_cast %33 : vector<24xf32> to vector<24x1xf32>
    %35 = vector.broadcast %34 : vector<24x1xf32> to vector<24x24xf32>
    %36 = arith.subf %32, %35 : vector<24x24xf32>
    %37 = math.exp %36 : vector<24x24xf32>
    %cst_25 = arith.constant dense<0.000000e+00> : vector<24xf32>
    %38 = vector.multi_reduction <add>, %37, %cst_25 [1] : vector<24x24xf32> to vector<24xf32>
    %39 = vector.shape_cast %38 : vector<24xf32> to vector<24x1xf32>
    %40 = tpu.reciprocal %39 {approx = true} : vector<24x1xf32> -> vector<24x1xf32>
    %41 = arith.truncf %37 : vector<24x24xf32> to vector<24x24xbf16>
    %42 = arith.truncf %24 : vector<24x8xf32> to vector<24x8xbf16>
    %cst_26 = arith.constant dense<0.000000e+00> : vector<24x8xf32>
    %43 = tpu.matmul %41, %42, %cst_26 {dimension_numbers = #tpu.dot_dimension_numbers<[1], [0], [0], [1], [0, 0, 1, 1], [], []>} : vector<24x24xbf16>, vector<24x8xbf16>, vector<24x8xf32> -> vector<24x8xf32>
    %44 = vector.broadcast %40 : vector<24x1xf32> to vector<24x8xf32>
    %45 = arith.mulf %43, %44 : vector<24x8xf32>
    %c0_27 = arith.constant 0 : index
    %c0_28 = arith.constant 0 : index
    %46 = vector.load %arg15[%c0_27, %c0_28] : memref<24x32xf32, #tpu.memory_space<vmem>>, vector<24x32xf32>
    %47 = arith.truncf %45 : vector<24x8xf32> to vector<24x8xbf16>
    %c0_29 = arith.constant 0 : index
    %c0_30 = arith.constant 0 : index
    %c0_31 = arith.constant 0 : index
    %48 = vector.load %arg11[%c0_29, %c0_30, %c0_31] : memref<1x8x32xbf16, #tpu.memory_space<vmem>>, vector<1x8x32xbf16>
    %49 = vector.shape_cast %48 : vector<1x8x32xbf16> to vector<8x32xbf16>
    %cst_32 = arith.constant dense<0.000000e+00> : vector<24x32xf32>
    %50 = tpu.matmul %47, %49, %cst_32 {dimension_numbers = #tpu.dot_dimension_numbers<[1], [0], [0], [1], [0, 0, 1, 1], [], []>} : vector<24x8xbf16>, vector<8x32xbf16>, vector<24x32xf32> -> vector<24x32xf32>
    %51 = arith.addf %46, %50 : vector<24x32xf32>
    %c0_33 = arith.constant 0 : index
    %c0_34 = arith.constant 0 : index
    %52 = vector.load %arg15[%c0_33, %c0_34] : memref<24x32xf32, #tpu.memory_space<vmem>>, vector<24x32xf32>
    tpu.vector_store %arg15[%c0_33, %c0_34], %51 {strides = array<i32>} : memref<24x32xf32, #tpu.memory_space<vmem>>, vector<24x32xf32>,
    %c3_i32 = arith.constant 3 : i32
    %53 = arith.cmpi eq, %arg1, %c3_i32 : i32
    %54 = arith.extui %53 : i1 to i32
    %c0_i32_35 = arith.constant 0 : i32
    %55 = arith.cmpi ne, %54, %c0_i32_35 : i32
    scf.if %55 {
      %c0_36 = arith.constant 0 : index
      %c0_37 = arith.constant 0 : index
      %c0_38 = arith.constant 0 : index
      %56 = vector.load %arg2[%c0_36, %c0_37, %c0_38] : memref<1x24x32xf32, #tpu.memory_space<vmem>>, vector<1x24x32xf32>
      %57 = vector.shape_cast %56 : vector<1x24x32xf32> to vector<24x32xf32>
      %c0_39 = arith.constant 0 : index
      %c0_40 = arith.constant 0 : index
      %58 = vector.load %arg15[%c0_39, %c0_40] : memref<24x32xf32, #tpu.memory_space<vmem>>, vector<24x32xf32>
      %59 = arith.addf %57, %58 : vector<24x32xf32>
      %c0_41 = arith.constant 0 : index
      %c0_42 = arith.constant 0 : index
      %60 = vector.load %arg12[%c0_41, %c0_42] : memref<1x32xf32, #tpu.memory_space<vmem>>, vector<1x32xf32>
      %61 = vector.broadcast %60 : vector<1x32xf32> to vector<24x32xf32>
      %62 = arith.addf %59, %61 : vector<24x32xf32>
      %c0_43 = arith.constant 0 : index
      %c0_44 = arith.constant 0 : index
      %c0_45 = arith.constant 0 : index
      %63 = vector.load %arg13[%c0_43, %c0_44, %c0_45] : memref<1x24x32xf32, #tpu.memory_space<vmem>>, vector<1x24x32xf32>
      %64 = vector.shape_cast %63 : vector<1x24x32xf32> to vector<24x32xf32>
      %65 = vector.shape_cast %62 : vector<24x32xf32> to vector<1x24x32xf32>
      tpu.vector_store %arg13[%c0_43, %c0_44, %c0_45], %65 {strides = array<i32>} : memref<1x24x32xf32, #tpu.memory_space<vmem>>, vector<1x24x32xf32>,
    } else {
    }
    return
  }
  func.func @transform_0(%arg0: i32, %arg1: i32) -> (i32, i32, i32) {
    %c0_i32 = arith.constant 0 : i32
    %c0_i32_0 = arith.constant 0 : i32
    %c0_i32_1 = arith.constant 0 : i32
    return %arg0, %c0_i32, %c0_i32_0 : i32, i32, i32
  }
  func.func @transform_1(%arg0: i32, %arg1: i32) -> (i32, i32) {
    %c0_i32 = arith.constant 0 : i32
    %c0_i32_0 = arith.constant 0 : i32
    %c0_i32_1 = arith.constant 0 : i32
    return %c0_i32, %c0_i32_0 : i32, i32
  }
  func.func @transform_2(%arg0: i32, %arg1: i32) -> (i32, i32) {
    %c0_i32 = arith.constant 0 : i32
    %c0_i32_0 = arith.constant 0 : i32
    %c0_i32_1 = arith.constant 0 : i32
    return %c0_i32, %c0_i32_0 : i32, i32
  }
  func.func @transform_3(%arg0: i32, %arg1: i32) -> (i32, i32, i32) {
    %c0_i32 = arith.constant 0 : i32
    %c0_i32_0 = arith.constant 0 : i32
    %c0_i32_1 = arith.constant 0 : i32
    return %arg1, %c0_i32, %c0_i32_0 : i32, i32, i32
  }
  func.func @transform_4(%arg0: i32, %arg1: i32) -> (i32, i32, i32) {
    %c0_i32 = arith.constant 0 : i32
    %c0_i32_0 = arith.constant 0 : i32
    %c0_i32_1 = arith.constant 0 : i32
    return %arg1, %c0_i32, %c0_i32_0 : i32, i32, i32
  }
  func.func @transform_5(%arg0: i32, %arg1: i32) -> (i32, i32, i32) {
    %c0_i32 = arith.constant 0 : i32
    %c0_i32_0 = arith.constant 0 : i32
    %c0_i32_1 = arith.constant 0 : i32
    return %arg1, %c0_i32, %c0_i32_0 : i32, i32, i32
  }
  func.func @transform_6(%arg0: i32, %arg1: i32) -> (i32, i32, i32) {
    %c0_i32 = arith.constant 0 : i32
    %c0_i32_0 = arith.constant 0 : i32
    %c0_i32_1 = arith.constant 0 : i32
    return %arg1, %c0_i32, %c0_i32_0 : i32, i32, i32
  }
  func.func @transform_7(%arg0: i32, %arg1: i32) -> (i32, i32, i32) {
    %c0_i32 = arith.constant 0 : i32
    %c0_i32_0 = arith.constant 0 : i32
    %c0_i32_1 = arith.constant 0 : i32
    return %arg1, %c0_i32, %c0_i32_0 : i32, i32, i32
  }
  func.func @transform_8(%arg0: i32, %arg1: i32) -> (i32, i32, i32) {
    %c0_i32 = arith.constant 0 : i32
    %c0_i32_0 = arith.constant 0 : i32
    %c0_i32_1 = arith.constant 0 : i32
    return %arg1, %c0_i32, %c0_i32_0 : i32, i32, i32
  }
  func.func @transform_9(%arg0: i32, %arg1: i32) -> (i32, i32, i32) {
    %c0_i32 = arith.constant 0 : i32
    %c0_i32_0 = arith.constant 0 : i32
    %c0_i32_1 = arith.constant 0 : i32
    return %arg1, %c0_i32, %c0_i32_0 : i32, i32, i32
  }
  func.func @transform_10(%arg0: i32, %arg1: i32) -> (i32, i32) {
    %c0_i32 = arith.constant 0 : i32
    %c0_i32_0 = arith.constant 0 : i32
    %c0_i32_1 = arith.constant 0 : i32
    return %c0_i32, %c0_i32_0 : i32, i32
  }
  func.func @transform_11(%arg0: i32, %arg1: i32) -> (i32, i32, i32) {
    %c0_i32 = arith.constant 0 : i32
    %c0_i32_0 = arith.constant 0 : i32
    %c0_i32_1 = arith.constant 0 : i32
    return %arg0, %c0_i32, %c0_i32_0 : i32, i32, i32
  }
}

module attributes {stable_mosaic.version = 11 : i64} {
  func.func @ln_mlp_kernel(%arg0: i32, %arg1: memref<48x32xf32, #tpu.memory_space<vmem>>, %arg2: memref<1x32xf32, #tpu.memory_space<vmem>>, %arg3: memref<1x32xf32, #tpu.memory_space<vmem>>, %arg4: memref<32x128xbf16, #tpu.memory_space<vmem>>, %arg5: memref<1x128xf32, #tpu.memory_space<vmem>>, %arg6: memref<128x32xbf16, #tpu.memory_space<vmem>>, %arg7: memref<1x32xf32, #tpu.memory_space<vmem>>, %arg8: memref<48x32xf32, #tpu.memory_space<vmem>>) attributes {dimension_semantics = [#tpu.dimension_semantics<parallel>], iteration_bounds = array<i64: 1>, scalar_prefetch = 0 : i64, scratch_operands = 0 : i64, tpu.core_type = #tpu.core_type<tc>, window_params = [{transform_indices = @transform_0, window_bounds = array<i64: 48, 32>}, {pipeline_mode = #tpu.pipeline_mode<synchronous>, transform_indices = @transform_1, window_bounds = array<i64: 1, 32>}, {pipeline_mode = #tpu.pipeline_mode<synchronous>, transform_indices = @transform_2, window_bounds = array<i64: 1, 32>}, {pipeline_mode = #tpu.pipeline_mode<synchronous>, transform_indices = @transform_3, window_bounds = array<i64: 32, 128>}, {pipeline_mode = #tpu.pipeline_mode<synchronous>, transform_indices = @transform_4, window_bounds = array<i64: 1, 128>}, {pipeline_mode = #tpu.pipeline_mode<synchronous>, transform_indices = @transform_5, window_bounds = array<i64: 128, 32>}, {pipeline_mode = #tpu.pipeline_mode<synchronous>, transform_indices = @transform_6, window_bounds = array<i64: 1, 32>}, {transform_indices = @transform_7, window_bounds = array<i64: 48, 32>}]} {
    %c0 = arith.constant 0 : index
    %c0_0 = arith.constant 0 : index
    %0 = vector.load %arg1[%c0, %c0_0] : memref<48x32xf32, #tpu.memory_space<vmem>>, vector<48x32xf32>
    %c0_1 = arith.constant 0 : index
    %c0_2 = arith.constant 0 : index
    %1 = vector.load %arg2[%c0_1, %c0_2] : memref<1x32xf32, #tpu.memory_space<vmem>>, vector<1x32xf32>
    %c0_3 = arith.constant 0 : index
    %c0_4 = arith.constant 0 : index
    %2 = vector.load %arg3[%c0_3, %c0_4] : memref<1x32xf32, #tpu.memory_space<vmem>>, vector<1x32xf32>
    %cst = arith.constant dense<0.000000e+00> : vector<48xf32>
    %3 = vector.multi_reduction <add>, %0, %cst [1] : vector<48x32xf32> to vector<48xf32>
    %4 = vector.shape_cast %3 : vector<48xf32> to vector<48x1xf32>
    %cst_5 = arith.constant 3.200000e+01 : f32
    %5 = vector.broadcast %cst_5 : f32 to vector<48x1xf32>
    %6 = arith.divf %4, %5 : vector<48x1xf32>
    %7 = vector.broadcast %6 : vector<48x1xf32> to vector<48x32xf32>
    %8 = arith.subf %0, %7 : vector<48x32xf32>
    %9 = arith.mulf %8, %8 : vector<48x32xf32>
    %cst_6 = arith.constant dense<0.000000e+00> : vector<48xf32>
    %10 = vector.multi_reduction <add>, %9, %cst_6 [1] : vector<48x32xf32> to vector<48xf32>
    %11 = vector.shape_cast %10 : vector<48xf32> to vector<48x1xf32>
    %cst_7 = arith.constant 3.200000e+01 : f32
    %12 = vector.broadcast %cst_7 : f32 to vector<48x1xf32>
    %13 = arith.divf %11, %12 : vector<48x1xf32>
    %14 = vector.broadcast %6 : vector<48x1xf32> to vector<48x32xf32>
    %15 = arith.subf %0, %14 : vector<48x32xf32>
    %cst_8 = arith.constant 9.99999997E-7 : f32
    %16 = vector.broadcast %cst_8 : f32 to vector<48x1xf32>
    %17 = arith.addf %13, %16 : vector<48x1xf32>
    %18 = math.rsqrt %17 : vector<48x1xf32>
    %19 = vector.broadcast %18 : vector<48x1xf32> to vector<48x32xf32>
    %20 = arith.mulf %15, %19 : vector<48x32xf32>
    %21 = vector.broadcast %1 : vector<1x32xf32> to vector<48x32xf32>
    %22 = arith.mulf %20, %21 : vector<48x32xf32>
    %23 = vector.broadcast %2 : vector<1x32xf32> to vector<48x32xf32>
    %24 = arith.addf %22, %23 : vector<48x32xf32>
    %25 = arith.truncf %24 : vector<48x32xf32> to vector<48x32xbf16>
    %c0_9 = arith.constant 0 : index
    %c0_10 = arith.constant 0 : index
    %26 = vector.load %arg4[%c0_9, %c0_10] : memref<32x128xbf16, #tpu.memory_space<vmem>>, vector<32x128xbf16>
    %cst_11 = arith.constant dense<0.000000e+00> : vector<48x128xf32>
    %27 = tpu.matmul %25, %26, %cst_11 {dimension_numbers = #tpu.dot_dimension_numbers<[1], [0], [0], [1], [0, 0, 1, 1], [], []>} : vector<48x32xbf16>, vector<32x128xbf16>, vector<48x128xf32> -> vector<48x128xf32>
    %c0_12 = arith.constant 0 : index
    %c0_13 = arith.constant 0 : index
    %28 = vector.load %arg5[%c0_12, %c0_13] : memref<1x128xf32, #tpu.memory_space<vmem>>, vector<1x128xf32>
    %29 = vector.broadcast %28 : vector<1x128xf32> to vector<48x128xf32>
    %30 = arith.addf %27, %29 : vector<48x128xf32>
    %cst_14 = arith.constant 5.000000e-01 : f32
    %31 = vector.broadcast %cst_14 : f32 to vector<48x128xf32>
    %32 = arith.mulf %31, %30 : vector<48x128xf32>
    %cst_15 = arith.constant 2.000000e+00 : f32
    %33 = math.sqrt %cst_15 : f32
    %cst_16 = arith.constant 1.000000e+00 : f32
    %34 = arith.divf %cst_16, %33 : f32
    %35 = vector.broadcast %34 : f32 to vector<48x128xf32>
    %36 = arith.mulf %30, %35 : vector<48x128xf32>
    %37 = math.erf %36 : vector<48x128xf32>
    %cst_17 = arith.constant 1.000000e+00 : f32
    %38 = vector.broadcast %cst_17 : f32 to vector<48x128xf32>
    %39 = arith.addf %38, %37 : vector<48x128xf32>
    %40 = arith.mulf %32, %39 : vector<48x128xf32>
    %41 = arith.truncf %40 : vector<48x128xf32> to vector<48x128xbf16>
    %c0_18 = arith.constant 0 : index
    %c0_19 = arith.constant 0 : index
    %42 = vector.load %arg6[%c0_18, %c0_19] : memref<128x32xbf16, #tpu.memory_space<vmem>>, vector<128x32xbf16>
    %cst_20 = arith.constant dense<0.000000e+00> : vector<48x32xf32>
    %43 = tpu.matmul %41, %42, %cst_20 {dimension_numbers = #tpu.dot_dimension_numbers<[1], [0], [0], [1], [0, 0, 1, 1], [], []>} : vector<48x128xbf16>, vector<128x32xbf16>, vector<48x32xf32> -> vector<48x32xf32>
    %44 = arith.addf %0, %43 : vector<48x32xf32>
    %c0_21 = arith.constant 0 : index
    %c0_22 = arith.constant 0 : index
    %45 = vector.load %arg7[%c0_21, %c0_22] : memref<1x32xf32, #tpu.memory_space<vmem>>, vector<1x32xf32>
    %46 = vector.broadcast %45 : vector<1x32xf32> to vector<48x32xf32>
    %47 = arith.addf %44, %46 : vector<48x32xf32>
    %c0_23 = arith.constant 0 : index
    %c0_24 = arith.constant 0 : index
    %48 = vector.load %arg8[%c0_23, %c0_24] : memref<48x32xf32, #tpu.memory_space<vmem>>, vector<48x32xf32>
    tpu.vector_store %arg8[%c0_23, %c0_24], %47 {strides = array<i32>} : memref<48x32xf32, #tpu.memory_space<vmem>>, vector<48x32xf32>,
    return
  }
  func.func @transform_0(%arg0: i32) -> (i32, i32) {
    %c0_i32 = arith.constant 0 : i32
    %c0_i32_0 = arith.constant 0 : i32
    return %arg0, %c0_i32 : i32, i32
  }
  func.func @transform_1(%arg0: i32) -> (i32, i32) {
    %c0_i32 = arith.constant 0 : i32
    %c0_i32_0 = arith.constant 0 : i32
    %c0_i32_1 = arith.constant 0 : i32
    return %c0_i32, %c0_i32_0 : i32, i32
  }
  func.func @transform_2(%arg0: i32) -> (i32, i32) {
    %c0_i32 = arith.constant 0 : i32
    %c0_i32_0 = arith.constant 0 : i32
    %c0_i32_1 = arith.constant 0 : i32
    return %c0_i32, %c0_i32_0 : i32, i32
  }
  func.func @transform_3(%arg0: i32) -> (i32, i32) {
    %c0_i32 = arith.constant 0 : i32
    %c0_i32_0 = arith.constant 0 : i32
    %c0_i32_1 = arith.constant 0 : i32
    return %c0_i32, %c0_i32_0 : i32, i32
  }
  func.func @transform_4(%arg0: i32) -> (i32, i32) {
    %c0_i32 = arith.constant 0 : i32
    %c0_i32_0 = arith.constant 0 : i32
    %c0_i32_1 = arith.constant 0 : i32
    return %c0_i32, %c0_i32_0 : i32, i32
  }
  func.func @transform_5(%arg0: i32) -> (i32, i32) {
    %c0_i32 = arith.constant 0 : i32
    %c0_i32_0 = arith.constant 0 : i32
    %c0_i32_1 = arith.constant 0 : i32
    return %c0_i32, %c0_i32_0 : i32, i32
  }
  func.func @transform_6(%arg0: i32) -> (i32, i32) {
    %c0_i32 = arith.constant 0 : i32
    %c0_i32_0 = arith.constant 0 : i32
    %c0_i32_1 = arith.constant 0 : i32
    return %c0_i32, %c0_i32_0 : i32, i32
  }
  func.func @transform_7(%arg0: i32) -> (i32, i32) {
    %c0_i32 = arith.constant 0 : i32
    %c0_i32_0 = arith.constant 0 : i32
    return %arg0, %c0_i32 : i32, i32
  }
}

module attributes {stable_mosaic.version = 11 : i64} {
  func.func @ln_linear_kernel(%arg0: i32, %arg1: memref<2x32xf32, #tpu.memory_space<vmem>>, %arg2: memref<1x32xf32, #tpu.memory_space<vmem>>, %arg3: memref<1x32xf32, #tpu.memory_space<vmem>>, %arg4: memref<32x128xbf16, #tpu.memory_space<vmem>>, %arg5: memref<1x128xf32, #tpu.memory_space<vmem>>, %arg6: memref<2x128xf32, #tpu.memory_space<vmem>>) attributes {dimension_semantics = [#tpu.dimension_semantics<parallel>], iteration_bounds = array<i64: 1>, scalar_prefetch = 0 : i64, scratch_operands = 0 : i64, tpu.core_type = #tpu.core_type<tc>, window_params = [{transform_indices = @transform_0, window_bounds = array<i64: 2, 32>}, {pipeline_mode = #tpu.pipeline_mode<synchronous>, transform_indices = @transform_1, window_bounds = array<i64: 1, 32>}, {pipeline_mode = #tpu.pipeline_mode<synchronous>, transform_indices = @transform_2, window_bounds = array<i64: 1, 32>}, {pipeline_mode = #tpu.pipeline_mode<synchronous>, transform_indices = @transform_3, window_bounds = array<i64: 32, 128>}, {pipeline_mode = #tpu.pipeline_mode<synchronous>, transform_indices = @transform_4, window_bounds = array<i64: 1, 128>}, {transform_indices = @transform_5, window_bounds = array<i64: 2, 128>}]} {
    %c0 = arith.constant 0 : index
    %c0_0 = arith.constant 0 : index
    %0 = vector.load %arg1[%c0, %c0_0] : memref<2x32xf32, #tpu.memory_space<vmem>>, vector<2x32xf32>
    %c0_1 = arith.constant 0 : index
    %c0_2 = arith.constant 0 : index
    %1 = vector.load %arg2[%c0_1, %c0_2] : memref<1x32xf32, #tpu.memory_space<vmem>>, vector<1x32xf32>
    %c0_3 = arith.constant 0 : index
    %c0_4 = arith.constant 0 : index
    %2 = vector.load %arg3[%c0_3, %c0_4] : memref<1x32xf32, #tpu.memory_space<vmem>>, vector<1x32xf32>
    %cst = arith.constant dense<0.000000e+00> : vector<2xf32>
    %3 = vector.multi_reduction <add>, %0, %cst [1] : vector<2x32xf32> to vector<2xf32>
    %4 = vector.shape_cast %3 : vector<2xf32> to vector<2x1xf32>
    %cst_5 = arith.constant 3.200000e+01 : f32
    %5 = vector.broadcast %cst_5 : f32 to vector<2x1xf32>
    %6 = arith.divf %4, %5 : vector<2x1xf32>
    %7 = vector.broadcast %6 : vector<2x1xf32> to vector<2x32xf32>
    %8 = arith.subf %0, %7 : vector<2x32xf32>
    %9 = arith.mulf %8, %8 : vector<2x32xf32>
    %cst_6 = arith.constant dense<0.000000e+00> : vector<2xf32>
    %10 = vector.multi_reduction <add>, %9, %cst_6 [1] : vector<2x32xf32> to vector<2xf32>
    %11 = vector.shape_cast %10 : vector<2xf32> to vector<2x1xf32>
    %cst_7 = arith.constant 3.200000e+01 : f32
    %12 = vector.broadcast %cst_7 : f32 to vector<2x1xf32>
    %13 = arith.divf %11, %12 : vector<2x1xf32>
    %14 = vector.broadcast %6 : vector<2x1xf32> to vector<2x32xf32>
    %15 = arith.subf %0, %14 : vector<2x32xf32>
    %cst_8 = arith.constant 9.99999997E-7 : f32
    %16 = vector.broadcast %cst_8 : f32 to vector<2x1xf32>
    %17 = arith.addf %13, %16 : vector<2x1xf32>
    %18 = math.rsqrt %17 : vector<2x1xf32>
    %19 = vector.broadcast %18 : vector<2x1xf32> to vector<2x32xf32>
    %20 = arith.mulf %15, %19 : vector<2x32xf32>
    %21 = vector.broadcast %1 : vector<1x32xf32> to vector<2x32xf32>
    %22 = arith.mulf %20, %21 : vector<2x32xf32>
    %23 = vector.broadcast %2 : vector<1x32xf32> to vector<2x32xf32>
    %24 = arith.addf %22, %23 : vector<2x32xf32>
    %25 = arith.truncf %24 : vector<2x32xf32> to vector<2x32xbf16>
    %c0_9 = arith.constant 0 : index
    %c0_10 = arith.constant 0 : index
    %26 = vector.load %arg4[%c0_9, %c0_10] : memref<32x128xbf16, #tpu.memory_space<vmem>>, vector<32x128xbf16>
    %cst_11 = arith.constant dense<0.000000e+00> : vector<2x128xf32>
    %27 = tpu.matmul %25, %26, %cst_11 {dimension_numbers = #tpu.dot_dimension_numbers<[1], [0], [0], [1], [0, 0, 1, 1], [], []>} : vector<2x32xbf16>, vector<32x128xbf16>, vector<2x128xf32> -> vector<2x128xf32>
    %c0_12 = arith.constant 0 : index
    %c0_13 = arith.constant 0 : index
    %28 = vector.load %arg5[%c0_12, %c0_13] : memref<1x128xf32, #tpu.memory_space<vmem>>, vector<1x128xf32>
    %29 = vector.broadcast %28 : vector<1x128xf32> to vector<2x128xf32>
    %30 = arith.addf %27, %29 : vector<2x128xf32>
    %c0_14 = arith.constant 0 : index
    %c0_15 = arith.constant 0 : index
    %31 = vector.load %arg6[%c0_14, %c0_15] : memref<2x128xf32, #tpu.memory_space<vmem>>, vector<2x128xf32>
    tpu.vector_store %arg6[%c0_14, %c0_15], %30 {strides = array<i32>} : memref<2x128xf32, #tpu.memory_space<vmem>>, vector<2x128xf32>,
    return
  }
  func.func @transform_0(%arg0: i32) -> (i32, i32) {
    %c0_i32 = arith.constant 0 : i32
    %c0_i32_0 = arith.constant 0 : i32
    return %arg0, %c0_i32 : i32, i32
  }
  func.func @transform_1(%arg0: i32) -> (i32, i32) {
    %c0_i32 = arith.constant 0 : i32
    %c0_i32_0 = arith.constant 0 : i32
    %c0_i32_1 = arith.constant 0 : i32
    return %c0_i32, %c0_i32_0 : i32, i32
  }
  func.func @transform_2(%arg0: i32) -> (i32, i32) {
    %c0_i32 = arith.constant 0 : i32
    %c0_i32_0 = arith.constant 0 : i32
    %c0_i32_1 = arith.constant 0 : i32
    return %c0_i32, %c0_i32_0 : i32, i32
  }
  func.func @transform_3(%arg0: i32) -> (i32, i32) {
    %c0_i32 = arith.constant 0 : i32
    %c0_i32_0 = arith.constant 0 : i32
    %c0_i32_1 = arith.constant 0 : i32
    return %c0_i32, %c0_i32_0 : i32, i32
  }
  func.func @transform_4(%arg0: i32) -> (i32, i32) {
    %c0_i32 = arith.constant 0 : i32
    %c0_i32_0 = arith.constant 0 : i32
    %c0_i32_1 = arith.constant 0 : i32
    return %c0_i32, %c0_i32_0 : i32, i32
  }
  func.func @transform_5(%arg0: i32) -> (i32, i32) {
    %c0_i32 = arith.constant 0 : i32
    %c0_i32_0 = arith.constant 0 : i32
    return %arg0, %c0_i32 : i32, i32
  }
}

</mosaic_0001>

<bundles_post_ra>
// kernel: vit_forward_pallas.6
= control target key start
LH: loop header
LB: loop body
LE: loop exit
PB: predicated region body
PF: predicated region fallthrough
CT: control target
= control target key end

     0   :  { %vm60_vm0 = vcmask 523264   ;;  %vm116_vm1 = vcmask 261120   ;;  %s213_s1 = inlined_call_operand.vmem [shape: bf16[64,32], index: 1, kind: input, shape index: {}]   ;;  %s214_s0 = inlined_call_operand.vmem [shape: f32[32,64], index: 0, kind: input, shape index: {}]   ;;  %s215_s2 = inlined_call_operand.vmem [shape: f32[1,32], index: 2, kind: input, shape index: {}]   ;;  %s216_s3 = inlined_call_operand.vmem [shape: f32[32,32], index: 3, kind: output, shape index: {}]  }
   0x1   :  { %v150_v0 = vld [vmem:[%s213_s1 + $0x18] sm:$0xff]   ;;  %v151_v1 = vld [vmem:[%s213_s1 + $0x10] sm:$0xff]   ;;  %v152_v2 = vld [vmem:[%s213_s1 + $0x8] sm:$0xff]  }
   0x2   :  { %138 = vmatprep.subr.bf16.mxu0 %v150_v0  ;;  %v15_v3 = vld [vmem:[%s214_s0] sm:$0xff]  ;;  %v16_v4 = vld [vmem:[%s214_s0 + $0x8] sm:$0xff]  ;;  %v17_v7 = vld [vmem:[%s214_s0 + $0x10] sm:$0xff] }
   0x3   :  { %139 = vmatpush3.bf16.msra.mxu0 %v150_v0  ;;  %v19_v5 = vpack.c.bf16 %v16_v4, %v15_v3  ;;  %v153_v6 = vld [vmem:[%s213_s1] sm:$0xff]   ;;  %v18_v8 = vld [vmem:[%s214_s0 + $0x18] sm:$0xff] }
   0x4   :  { %140 = vmatprep.subr.bf16.mxu0 %v151_v1  ;;  %v20_v9 = vpack.c.bf16 %v18_v8, %v17_v7  ;;  %v125_v10 = vld [vmem:[%s215_s2] ss:$0 sm:$0xff] }
   0x5   :  { %146 = vmatprep.mubr.msk.bf16.mxu0 %vm60_vm0, %v19_v5 }
   0x7   :  { %141 = vmatpush3.bf16.msra.mxu0 %v151_v1 }
   0x8   :  { %142 = vmatprep.subr.bf16.mxu0 %v152_v2 }
   0xb   :  { %143 = vmatpush3.bf16.msra.mxu0 %v152_v2 }
   0xc   :  { %144 = vmatprep.subr.bf16.mxu0 %v153_v6 }
   0xf   :  { %145 = vmatpush3.bf16.msra.mxu0 %v153_v6 }
  0x12   :  { %147 = vmatmul.mubr.msk.bf16.vlgmr.msra.gmra.mxu0 %vm60_vm0, %v20_v9 }
  0xd2   :  { %v148_v11 = vpop.f32.mrf.mxu0 }
  0xd3   :  { %v110_v12 = vadd.f32 %v148_v11, %v125_v10 }
  0xd4   :  { %v101_v13 = vpop.f32.mrf.mxu0 }
  0xd5   :  { %119 = vst.msk [vmem:[%s216_s3 + $0x10] sm:$0xff] %vm116_vm1, %v110_v12  ;;  %v102_v14 = vadd.f32 %v125_v10, %v101_v13 }
  0xd6   :  { %v149_v15 = vpop.f32.mrf.mxu0 }
  0xd7   :  { %117 = vst.msk [vmem:[%s216_s3] sm:$0xff] %vm116_vm1, %v102_v14  ;;  %v113_v16 = vadd.f32 %v149_v15, %v125_v10 }
  0xd8   :  { %v104_v17 = vpop.f32.mrf.mxu0 }
  0xd9   :  { %120 = vst.msk [vmem:[%s216_s3 + $0x18] sm:$0xff] %vm116_vm1, %v113_v16  ;;  %v105_v18 = vadd.f32 %v125_v10, %v104_v17 }
  0xdb   :  { %118 = vst.msk [vmem:[%s216_s3 + $0x8] sm:$0xff] %vm116_vm1, %v105_v18 }

// kernel: vit_forward_pallas.7
= control target key start
LH: loop header
LB: loop body
LE: loop exit
PB: predicated region body
PF: predicated region fallthrough
CT: control target
= control target key end

     0   :  { %s1536_s17 = smov 0   ;;  %s1538_s18 = smov 0   ;;  %s1714_s0 = inlined_call_operand.vmem [shape: f32[2,24,32], index: 0, kind: input, shape index: {}]   ;;  %s1715_s1 = inlined_call_operand.vmem [shape: f32[1,32], index: 1, kind: input, shape index: {}]   ;;  %s1716_s2 = inlined_call_operand.vmem [shape: f32[1,32], index: 2, kind: input, shape index: {}]   ;;  %s1717_s3 = inlined_call_operand.vmem [shape: bf16[4,32,8], index: 3, kind: input, shape index: {}]   ;;  %s1718_s4 = inlined_call_operand.vmem [shape: bf16[4,32,8], index: 4, kind: input, shape index: {}]   ;;  %s1719_s5 = inlined_call_operand.vmem [shape: bf16[4,32,8], index: 5, kind: input, shape index: {}]   ;;  %s1720_s6 = inlined_call_operand.vmem [shape: f32[4,1,8], index: 6, kind: input, shape index: {}]   ;;  %s1721_s7 = inlined_call_operand.vmem [shape: f32[4,1,8], index: 7, kind: input, shape index: {}]   ;;  %s1722_s8 = inlined_call_operand.vmem [shape: f32[4,1,8], index: 8, kind: input, shape index: {}]   ;;  %s1723_s9 = inlined_call_operand.vmem [shape: bf16[4,8,32], index: 9, kind: input, shape index: {}]   ;;  %s1724_s10 = inlined_call_operand.vmem [shape: f32[1,32], index: 10, kind: input, shape index: {}]   ;;  %s1725_s11 = inlined_call_operand.vmem [shape: f32[2,24,32], index: 11, kind: output, shape index: {}]  }
   0x1   :  { %1729 = sst [smem:[#allocation9_spill]] %s1714_s0  ;;  %s1540_s19 = smov 0  }
   0x2   :  { %1730 = sst [smem:[#allocation10_spill]] %s1717_s3  ;;  %s1542_s20 = smov 0  }
   0x3   :  { %1731 = sst [smem:[#allocation11_spill]] %s1718_s4  ;;  %s1544_s21 = smov 0  }
   0x4 LB: > { %1732 = sst [smem:[#allocation4_spill]] %s1465_s19  ;;  %s30_s22 = sadd.s32 1, %s1465_s19  ;;  %s1473_s21 = sphi %s1544_s21, %s21_s21   ;;  %s1469_s20 = sphi %s1542_s20, %s1745_s20   ;;  %s1465_s19 = sphi %s1540_s19, %s1744_s19   ;;  %s1461_s18 = sphi %s1538_s18, %s1743_s18   ;;  %s1457_s17 = sphi %s1536_s17, %s1742_s17  }
   0x5   : > { %1733 = sst [smem:[#allocation5_spill]] %s1469_s20  ;;  %s33_s23 = sadd.s32 1, %s1469_s20 }
   0x6   : > { %1734 = sst [smem:[#allocation6_spill]] %s1473_s21  ;;  %p31_p0 = scmp.ge.s32.totalorder %s30_s22, 4 }
   0x7   : > { %p1245_p1 = scmp.ge.s32.totalorder %s1473_s21, 1  ;;  %p412_p2 = scmp.lt.s32.totalorder %s1473_s21, 9 }
   0x8   : > { %s1747_s22 = smov (%p31_p0, %s30_s22), 0  ;;  %s1749_s23 = smov (!%p31_p0, %s33_s23), %s1469_s20 }
   0x9   : > { %1735 = sst [smem:[#allocation7_spill]] %s1747_s22  ;;  %p413_p3 = pnand %p1245_p1, %p412_p2 }
   0xa   : > { %p35_p4 = scmp.ge.s32.totalorder %s1749_s23, 2  ;;  %p480_p5 = scmp.lt.s32.totalorder (!%p413_p3), %s1461_s18, 1 }
   0xb   : > { %416 = sbr.rel (%p413_p3) target bundleno = 1346 (0x542), region = 64  ;;  %p485_p6 = scmp.lt.s32.totalorder (!%p413_p3), %s1457_s17, 3 }
   0xc   : > { %s1751_s23 = smov (%p35_p4, %s1749_s23), 0  ;;  %s1737_s0 = sld [smem:[#allocation9_spill]] (!%p413_p3) }
   0xd   : > { %1736 = sst [smem:[#allocation8_spill]] %s1751_s23  ;;  %p1255_p7 = scmp.ne.s32.totalorder (!%p413_p3), %s1457_s17, 0 }
   0xe   : > { %s1738_s3 = sld [smem:[#allocation10_spill]] (!%p413_p3) }
   0xf   : > { %s1739_s4 = sld [smem:[#allocation11_spill]] (!%p413_p3) }
  0x10   : > { %s1753_s18 = smov (!%p480_p5, %s1461_s18), 1 }
  0x11   : > { %s1570_s24 = scalar_select %p485_p6, %s1457_s17, 3 }
  0x12   : > { %s1367_s25 = smul.u32 24, %s1753_s18 }
  0x13   : > { %s1288_s26 = sshll.u32 %s1570_s24, 4  ;;  %s505_s30 = scalar_lea.vmem %s1721_s7, %s1570_s24 }
  0x14   : > { %s1580_s13 = scalar_lea.vmem %s1737_s0, %s1367_s25  ;;  %s1585_s16 = scalar_lea.vmem %s1738_s3, %s1288_s26 }
  0x15   : > { %s1590_s20 = scalar_lea.vmem %s1739_s4, %s1288_s26  ;;  %s1595_s27 = scalar_lea.vmem %s1719_s5, %s1288_s26 }
  0x16   : > { %s508_s14 = scalar_lea.vmem %s1722_s8, %s1570_s24  ;;  %s1253_s15 = sshll.u32 %s1570_s24, 2 }
  0x17   : > { %s1609_s22 = scalar_lea.vmem %s1725_s11, %s1367_s25  ;;  %s1614_s19 = scalar_lea.vmem %s1723_s9, %s1253_s15 }
  0x18   : > { %522 = sbr.rel (%p1255_p7) target bundleno = 346 (0x15a), region = 68 }
  0x1d   : > { %v523_v0 = vld [vmem:[%s1580_s13] sm:$0xff]  ;;  %vm528_vm0 = vcmask 261120   ;;  %v525_v1 = vld [vmem:[%s1580_s13 + $0x10] sm:$0xff]  ;;  %v524_v2 = vld [vmem:[%s1580_s13 + $0x8] sm:$0xff]  ;;  %v1475_v4 = vmov 0.0   ;;  %vm600_vm1 = vcmask 257024  }
  0x1e   : > { %v529_v3 = vsel %vm528_vm0, %v523_v0, 0.0  ;;  %604 = vst.msk [vmem:[#allocation3] sm:$0xff] %vm528_vm0, %v1475_v4  ;;  %605 = vst.msk [vmem:[#allocation3 + $0x8] sm:$0xff] %vm528_vm0, %v1475_v4  ;;  %v535_v5 = vsel %vm528_vm0, %v525_v1, 0.0  ;;  %v532_v6 = vsel %vm528_vm0, %v524_v2, 0.0 }
  0x1f   : > { %606 = vst.msk [vmem:[#allocation3 + $0x10] sm:$0xff] %vm528_vm0, %v1475_v4  ;;  %530 = vadd.xlane.f32.xlu0 %v529_v3  ;;  %536 = vadd.xlane.f32.xlu1 %v535_v5  ;;  %v1256_v32 = vld [vmem:[%s1715_s1] ss:$0 sm:$0xff] }
  0x20   : > { %v1257_v34 = vld [vmem:[%s1716_s2] ss:$0 sm:$0xff] }
  0x23   : > { %533 = vadd.xlane.f32.xlu0 %v532_v6 }
  0xa8   : > { %v531_v7 = vpop.xlane.xlu0 %530  ;;  %v537_v8 = vpop.xlane.xlu1 %536 }
  0xa9   : > { %v539_v9 = vmul.f32 0.03125, %v531_v7  ;;  %v541_v10 = vmul.f32 0.03125, %v537_v8 }
  0xab   : > { %v542_v11 = vsub.f32 %v523_v0, %v539_v9  ;;  %v544_v12 = vsub.f32 %v525_v1, %v541_v10 }
  0xac   : > { %v534_v13 = vpop.xlane.xlu0 %533 }
  0xad   : > { %v540_v14 = vmul.f32 0.03125, %v534_v13  ;;  %v545_v15 = vmul.f32 %v542_v11, %v542_v11  ;;  %v547_v16 = vmul.f32 %v544_v12, %v544_v12 }
  0xaf   : > { %v543_v17 = vsub.f32 %v524_v2, %v540_v14  ;;  %v548_v18 = vsel %vm528_vm0, %v545_v15, 0.0  ;;  %v554_v19 = vsel %vm528_vm0, %v547_v16, 0.0 }
  0xb0   : > { %549 = vadd.xlane.f32.xlu1 %v548_v18 }
  0xb1   : > { %v546_v20 = vmul.f32 %v543_v17, %v543_v17 }
  0xb3   : > { %v551_v21 = vsel %vm528_vm0, %v546_v20, 0.0 }
  0xb4   : > { %555 = vadd.xlane.f32.xlu1 %v554_v19  ;;  %552 = vadd.xlane.f32.xlu0 %v551_v21 }
 0x139   : > { %v550_v22 = vpop.xlane.xlu1 %549 }
 0x13a   : > { %v557_v23 = vmul.f32 0.03125, %v550_v22 }
 0x13c   : > { %v560_v24 = vadd.f32 1e-06, %v557_v23 }
 0x13d   : > { %v556_v25 = vpop.xlane.xlu1 %555  ;;  %v553_v26 = vpop.xlane.xlu0 %552 }
 0x13e   : > { %1409 = vrsqrt.f32 %v560_v24  ;;  %v559_v27 = vmul.f32 0.03125, %v556_v25  ;;  %v558_v28 = vmul.f32 0.03125, %v553_v26 }
 0x140   : > { %v562_v29 = vadd.f32 1e-06, %v559_v27  ;;  %v561_v30 = vadd.f32 1e-06, %v558_v28 }
 0x142   : > { %1411 = vrsqrt.f32 %v562_v29 }
 0x143   : > { %1413 = vrsqrt.f32 %v561_v30 }
 0x14b   : > { %v1410_v31 = vpop.eup %1409 }
 0x14c   : > { %v566_v33 = vmul.f32 %v1410_v31, %v542_v11 }
 0x14e   : > { %v575_v35 = vmul.f32 %v1256_v32, %v566_v33 }
 0x14f   : > { %v1412_v36 = vpop.eup %1411 }
 0x150   : > { %v1414_v37 = vpop.eup %1413  ;;  %v584_v38 = vadd.f32 %v1257_v34, %v575_v35  ;;  %v568_v39 = vmul.f32 %v1412_v36, %v544_v12 }
 0x151   : > { %v567_v40 = vmul.f32 %v1414_v37, %v543_v17 }
 0x152   : > { %v1291_v41 = vpack.c.bf16 %v584_v38, %v584_v38  ;;  %v577_v42 = vmul.f32 %v1256_v32, %v568_v39 }
 0x153   : > { %v576_v43 = vmul.f32 %v1256_v32, %v567_v40 }
 0x154   : > { %601 = vst.msk [vmem:[#allocation2] sm:$0xf] %vm600_vm1, %v1291_v41  ;;  %v586_v44 = vadd.f32 %v1257_v34, %v577_v42 }
 0x155   : > { %v585_v45 = vadd.f32 %v1257_v34, %v576_v43 }
 0x156   : > { %v1293_v46 = vpack.c.bf16 %v586_v44, %v586_v44 }
 0x157   : > { %v1292_v47 = vpack.c.bf16 %v585_v45, %v585_v45 }
 0x158   : > { %603 = vst.msk [vmem:[#allocation2 + $0x8] sm:$0xf] %vm600_vm1, %v1293_v46 }
 0x159   : > { %602 = vst.msk [vmem:[#allocation2 + $0x4] sm:$0xf] %vm600_vm1, %v1292_v47 }
 0x15a PF: > { %v1415_v48 = vld [vmem:[%s1590_s20 + $0x8] sm:$0xff]   ;;  %v1417_v50 = vld [vmem:[%s1590_s20] sm:$0xff]   ;;  %vm641_vm2 = vcmask 261120   ;;  %vm842_vm3 = vcmask 64512   ;;  %v903_v14 = vlaneseq  ;;  %vm909_vm5 = vcmask 195584   ;;  %p1284_p8 = scmp.ne.s32.totalorder %s1457_s17, 3 }
 0x15b   : > { %v1416_v49 = vld [vmem:[%s1585_s16 + $0x8] sm:$0xff]   ;;  %1325 = vmatprep.subr.bf16.mxu1 %v1415_v48  ;;  %v1418_v51 = vld [vmem:[%s1585_s16] sm:$0xff]   ;;  %s1740_s16 = scalar_lea.vmem %s1720_s6, %s1570_s24  ;;  %vm950_vm6 = vcmask 1043456  }
 0x15c   : > { %1326 = vmatpush3.bf16.msra.mxu1 %v1415_v48  ;;  %1317 = vmatprep.subr.bf16.mxu0 %v1416_v49  ;;  %v1421_v54 = vld [vmem:[%s1595_s27 + $0x8] sm:$0xff]   ;;  %v1422_v55 = vld [vmem:[%s1595_s27] sm:$0xff]   ;;  %v904_v15 = vand.u32 127, %v903_v14  ;;  %v1006_v14 = vld [vmem:[#allocation3 + $0x8] sm:$0xff] }
 0x15d   : > { %1318 = vmatpush3.bf16.msra.mxu0 %v1416_v49  ;;  %1327 = vmatprep.subr.bf16.mxu1 %v1417_v50  ;;  %v1268_v56 = vld [vmem:[%s505_s30] ss:$0 sm:$0xff] }
 0x15e   : > { %1319 = vmatprep.subr.bf16.mxu0 %v1418_v51  ;;  %v1261_v62 = vld [vmem:[%s1740_s16] ss:$0 sm:$0xff]  ;;  %vm905_vm4 = vcmp.lt.s32.totalorder %v904_v15, 17 }
 0x15f   : > { %v1420_v53 = vld [vmem:[#allocation2 + $0x8] ss:$0 sps:$4 sm:$0xff]   ;;  %v1273_v27 = vld [vmem:[%s508_s14] ss:$0 sm:$0xff] }
 0x160   : > { %v1419_v52 = vld [vmem:[#allocation2] sm:$0xff]   ;;  %1328 = vmatpush3.bf16.msra.mxu1 %v1417_v50 }
 0x161   : > { %1329 = vmatprep.mubr.msk.bf16.mxu1 %vm641_vm2, %v1419_v52  ;;  %1321 = vmatprep.mubr.msk.bf16.mxu0 %vm641_vm2, %v1419_v52 }
 0x162   : > { %1320 = vmatpush3.bf16.msra.mxu0 %v1418_v51 }
 0x163   : > { %1330 = vmatmul.mubr.msk.bf16.vlgmr.msra.gmra.mxu1 %vm641_vm2, %v1420_v53  ;;  %1333 = vmatprep.subr.bf16.mxu0 %v1421_v54 }
 0x165   : > { %1322 = vmatmul.mubr.msk.bf16.vlgmr.msra.gmra.mxu0 %vm641_vm2, %v1420_v53 }
 0x166   : > { %1337 = vmatprep.mubr.msk.bf16.mxu0 %vm641_vm2, %v1419_v52  ;;  %1334 = vmatpush3.bf16.msra.mxu0 %v1421_v54  ;;  %v1010_v54 = vld [vmem:[%s1614_s19] sm:$0xf] }
 0x167   : > { %1335 = vmatprep.subr.bf16.mxu0 %v1422_v55 }
 0x16a   : > { %1336 = vmatpush3.bf16.msra.mxu0 %v1422_v55  ;;  %v1018_v55 = vsel %vm950_vm6, %v1010_v54, 0 }
 0x16d   : > { %1338 = vmatmul.mubr.msk.bf16.vlgmr.msra.gmra.mxu0 %vm641_vm2, %v1420_v53 }
 0x223   : > { %v1331_v57 = vpop.f32.mrf.mxu1 }
 0x224   : > { %v762_v58 = vadd.f32 %v1331_v57, %v1268_v56 }
 0x225   : > { %v1323_v59 = vpop.f32.mrf.mxu0  ;;  %v753_v60 = vpop.f32.mrf.mxu1 }
 0x226   : > { %v841_v61 = vpack.c.bf16 %v762_v58, %v762_v58  ;;  %v754_v5 = vadd.f32 %v1268_v56, %v753_v60  ;;  %v691_v12 = vadd.f32 %v1323_v59, %v1261_v62 }
 0x227   : > { %v682_v63 = vpop.f32.mrf.mxu0  ;;  %v1332_v0 = vpop.f32.mrf.mxu1 }
 0x228   : > { %v853_v1 = vsel %vm842_vm3, %v841_v61, 0  ;;  %1363 = vmatprep.subr.msk.bf16.mxu1 %vm842_vm3, %v841_v61  ;;  %v683_v3 = vadd.f32 %v1261_v62, %v682_v63  ;;  %v839_v13 = vpack.c.bf16 %v691_v12, %v691_v12 }
 0x229   : > { %v1324_v2 = vpop.f32.mrf.mxu0  ;;  %v756_v4 = vpop.f32.mrf.mxu1  ;;  %1342 = vmatpush3.bf16.xpose.msra.mxu1 %v853_v1 }
 0x22a   : > { %v757_v6 = vadd.f32 %v1268_v56, %v756_v4 }
 0x22b   : > { %v685_v7 = vpop.f32.mrf.mxu0 }
 0x22c   : > { %v686_v8 = vadd.f32 %v1261_v62, %v685_v7  ;;  %v840_v9 = vpack.c.bf16 %v757_v6, %v754_v5  ;;  %v1007_v7 = vld [vmem:[#allocation3 + $0x10] sm:$0xff] }
 0x22d   : > { %v1339_v26 = vpop.f32.mrf.mxu0 }
 0x22e   : > { %v838_v10 = vpack.c.bf16 %v686_v8, %v683_v3  ;;  %1364 = vmatprep.subr.msk.bf16.mxu1 %vm842_vm3, %v840_v9  ;;  %v850_v11 = vsel %vm842_vm3, %v840_v9, 0  ;;  %v833_v28 = vadd.f32 %v1339_v26, %v1273_v27  ;;  %v1005_v9 = vld [vmem:[#allocation3] sm:$0xff] }
 0x22f   : > { %v824_v29 = vpop.f32.mrf.mxu0 }
 0x230   : > { %1345 = vmatprep.mubr.msk.bf16.mxu1 %vm842_vm3, %v838_v10  ;;  %v943_v30 = vpack.c.bf16 %v833_v28, %v833_v28  ;;  %v825_v32 = vadd.f32 %v1273_v27, %v824_v29 }
 0x231   : > { %1344 = vmatpush3.bf16.xpose.msra.mxu1 %v850_v11  ;;  %v1340_v31 = vpop.f32.mrf.mxu0 }
 0x232   : > { %v952_v33 = vsel %vm950_vm6, %v943_v30, 0  ;;  %1365 = vmatprep.subr.msk.bf16.mxu0 %vm950_vm6, %v943_v30 }
 0x233   : > { %v827_v34 = vpop.f32.mrf.mxu0  ;;  %1350 = vmatpush3.bf16.msra.mxu0 %v952_v33 }
 0x234   : > { %v828_v35 = vadd.f32 %v1273_v27, %v827_v34 }
 0x236   : > { %v942_v36 = vpack.c.bf16 %v828_v35, %v825_v32 }
 0x238   : > { %1346 = vmatmul.mubr.msk.bf16.vlgmr.msra.gmra.mxu1 %vm842_vm3, %v839_v13  ;;  %1351 = vmatprep.subr.bf16.mxu0 %v942_v36 }
 0x239   : > { %1352 = vmatpush3.bf16.msra.mxu0 %v942_v36 }
 0x23a   : > { %1366 = vmatprep.subr.msk.bf16.mxu0 %vm950_vm6, %v1010_v54 }
 0x2f8   : > { %v1347_v16 = vpop.f32.mrf.mxu1 }
 0x2f9   : > { %v908_v17 = vsel %vm905_vm4, %v1347_v16, -1e+30 }
 0x2fa   : > { %v889_v18 = vpop.f32.mrf.mxu1  ;;  %v916_v19 = vsel %vm909_vm5, %v908_v17, -inf }
 0x2fb   : > { %v906_v20 = vsel %vm905_vm4, %v889_v18, -1e+30  ;;  %917 = vmax.xlane.f32.xlu1 %v916_v19 }
 0x2fc   : > { %v1348_v21 = vpop.f32.mrf.mxu1  ;;  %v910_v22 = vsel %vm909_vm5, %v906_v20, -inf }
 0x2fd   : > { %911 = vmax.xlane.f32.xlu0 %v910_v22 }
 0x2fe   : > { %v892_v23 = vpop.f32.mrf.mxu1 }
 0x2ff   : > { %v907_v24 = vsel %vm905_vm4, %v892_v23, -1e+30 }
 0x300   : > { %v913_v25 = vsel %vm909_vm5, %v907_v24, -inf }
 0x301   : > { %914 = vmax.xlane.f32.xlu0 %v913_v25 }
 0x384   : > { %v918_v37 = vpop.xlane.xlu1 %917 }
 0x385   : > { %v921_v38 = vsub.f32 %v908_v17, %v918_v37 }
 0x386   : > { %v912_v39 = vpop.xlane.xlu0 %911 }
 0x387   : > { %v919_v40 = vsub.f32 %v906_v20, %v912_v39  ;;  %v926_v41 = vmul.f32 1.442695, %v921_v38 }
 0x389   : > { %v922_v42 = vmul.f32 1.442695, %v919_v40 }
 0x38a   : > { %v915_v43 = vpop.xlane.xlu0 %914 }
 0x38b   : > { %1423 = vpow2.f32 %v922_v42  ;;  %v920_v44 = vsub.f32 %v907_v24, %v915_v43 }
 0x38c   : > { %1425 = vpow2.f32 %v926_v41 }
 0x38d   : > { %v924_v45 = vmul.f32 1.442695, %v920_v44 }
 0x38f   : > { %1427 = vpow2.f32 %v924_v45 }
 0x398   : > { %v1424_v46 = vpop.eup %1423 }
 0x399   : > { %v928_v47 = vsel %vm909_vm5, %v1424_v46, 0.0  ;;  %v1426_v48 = vpop.eup %1425 }
 0x39a   : > { %929 = vadd.xlane.f32.xlu1 %v928_v47  ;;  %v934_v50 = vsel %vm909_vm5, %v1426_v48, 0.0  ;;  %v941_v53 = vpack.c.bf16 %v1426_v48, %v1426_v48 }
 0x39c   : > { %v1428_v49 = vpop.eup %1427 }
 0x39d   : > { %v931_v51 = vsel %vm909_vm5, %v1428_v49, 0.0  ;;  %v940_v52 = vpack.c.bf16 %v1428_v49, %v1424_v46 }
 0x39e   : > { %935 = vadd.xlane.f32.xlu1 %v934_v50  ;;  %932 = vadd.xlane.f32.xlu0 %v931_v51 }
 0x39f   : > { %1353 = vmatprep.mubr.msk.bf16.mxu0 %vm909_vm5, %v940_v52 }
 0x3a0   : > { %1354 = vmatmul.mubr.msk.bf16.vlgmr.msra.gmra.mxu0 %vm909_vm5, %v941_v53 }
 0x3a1   : > { %1358 = vmatpush3.bf16.msra.mxu0 %v1018_v55 }
 0x423   : > { %v930_v56 = vpop.xlane.xlu1 %929 }
 0x424   : > { %1429 = vrcp.f32 %v930_v56 }
 0x427   : > { %v936_v57 = vpop.xlane.xlu1 %935  ;;  %v933_v58 = vpop.xlane.xlu0 %932 }
 0x428   : > { %1431 = vrcp.f32 %v936_v57 }
 0x429   : > { %1433 = vrcp.f32 %v933_v58 }
 0x431   : > { %v1430_v61 = vpop.eup %1429 }
 0x435   : > { %v1432_v63 = vpop.eup %1431 }
 0x436   : > { %v1434_v0 = vpop.eup %1433 }
 0x460   : > { %v1355_v59 = vpop.f32.mrf.mxu0 }
 0x461   : > { %v1004_v1 = vmul.f32 %v1432_v63, %v1355_v59 }
 0x462   : > { %v988_v60 = vpop.f32.mrf.mxu0 }
 0x463   : > { %v1002_v3 = vmul.f32 %v1430_v61, %v988_v60  ;;  %v1009_v6 = vpack.c.bf16 %v1004_v1, %v1004_v1 }
 0x464   : > { %v1356_v62 = vpop.f32.mrf.mxu0 }
 0x466   : > { %v991_v2 = vpop.f32.mrf.mxu0 }
 0x467   : > { %v1003_v4 = vmul.f32 %v1434_v0, %v991_v2 }
 0x469   : > { %v1008_v5 = vpack.c.bf16 %v1003_v4, %v1002_v3 }
 0x46b   : > { %1359 = vmatprep.mubr.msk.bf16.mxu0 %vm842_vm3, %v1008_v5 }
 0x46c   : > { %1360 = vmatmul.mubr.msk.bf16.vlgmr.msra.gmra.mxu0 %vm842_vm3, %v1009_v6 }
 0x52c   : > { %v1361_v8 = vpop.f32.mrf.mxu0 }
 0x52d   : > { %v1070_v10 = vadd.f32 %v1361_v8, %v1007_v7 }
 0x52e   : > { %v1054_v11 = vpop.f32.mrf.mxu0 }
 0x52f   : > { %1073 = vst.msk [vmem:[#allocation3 + $0x10] sm:$0xff] %vm641_vm2, %v1070_v10  ;;  %v1068_v12 = vadd.f32 %v1054_v11, %v1005_v9 }
 0x530   : > { %v1362_v13 = vpop.f32.mrf.mxu0 }
 0x531   : > { %1071 = vst.msk [vmem:[#allocation3] sm:$0xff] %vm641_vm2, %v1068_v12  ;;  %1077 = sbr.rel (%p1284_p8) target bundleno = 1346 (0x542), region = 72 }
 0x532   : > { %v1057_v15 = vpop.f32.mrf.mxu0 }
 0x533   : > { %v1069_v16 = vadd.f32 %v1057_v15, %v1006_v14 }
 0x535   : > { %1072 = vst.msk [vmem:[#allocation3 + $0x8] sm:$0xff] %vm641_vm2, %v1069_v16 }
 0x536   : > { %v1078_v17 = vld [vmem:[%s1580_s13] sm:$0xff]  ;;  %v1079_v21 = vld [vmem:[%s1580_s13 + $0x8] sm:$0xff]  ;;  %v1080_v23 = vld [vmem:[%s1580_s13 + $0x10] sm:$0xff] }
 0x537   : > { %v1285_v19 = vld [vmem:[%s1724_s10] ss:$0 sm:$0xff] }
 0x538   : > { %v1081_v18 = vld [vmem:[#allocation3] sm:$0xff]  ;;  %v1083_v25 = vld [vmem:[#allocation3 + $0x10] sm:$0xff] }
 0x539   : > { %v1084_v20 = vadd.f32 %v1081_v18, %v1078_v17  ;;  %v1086_v27 = vadd.f32 %v1083_v25, %v1080_v23 }
 0x53b   : > { %v1094_v26 = vadd.f32 %v1285_v19, %v1084_v20  ;;  %v1096_v29 = vadd.f32 %v1285_v19, %v1086_v27 }
 0x53c   : > { %v1082_v22 = vld [vmem:[#allocation3 + $0x8] sm:$0xff] }
 0x53d   : > { %v1085_v24 = vadd.f32 %v1082_v22, %v1079_v21  ;;  %1097 = vst.msk [vmem:[%s1609_s22] sm:$0xff] %vm641_vm2, %v1094_v26  ;;  %1099 = vst.msk [vmem:[%s1609_s22 + $0x10] sm:$0xff] %vm641_vm2, %v1096_v29 }
 0x53f   : > { %v1095_v28 = vadd.f32 %v1285_v19, %v1085_v24 }
 0x541   : > { %1098 = vst.msk [vmem:[%s1609_s22 + $0x8] sm:$0xff] %vm641_vm2, %v1095_v28 }
 0x542 PF: > { %s1741_s17 = sld [smem:[#allocation6_spill]] }
 0x543   : > { %s1743_s18 = sld [smem:[#allocation5_spill]] }
 0x544   : > { %s1744_s19 = sld [smem:[#allocation7_spill]] }
 0x545   : > { %s1745_s20 = sld [smem:[#allocation8_spill]] }
 0x548   : > { %s21_s21 = sadd.s32 1, %s1741_s17   ;;  %s1742_s17 = sld [smem:[#allocation4_spill]] }
 0x549   : > { %p18_p9 = scmp.ge.s32.totalorder %s21_s21, 10  }
 0x54b   :  { %20 = sbr.rel (!%p18_p9) target bundleno = 4 (0x4), region = 123 }

// kernel: vit_forward_pallas.8
= control target key start
LH: loop header
LB: loop body
LE: loop exit
PB: predicated region body
PF: predicated region fallthrough
CT: control target
= control target key end

     0   :  { %vm35_vm0 = vcmask 261120   ;;  %v543_v42 = vmov 0.0   ;;  %vm544_vm1 = vmmov 0   ;;  %s774_s0 = inlined_call_operand.vmem [shape: f32[48,32], index: 0, kind: input, shape index: {}]   ;;  %s775_s3 = inlined_call_operand.vmem [shape: bf16[32,128], index: 3, kind: input, shape index: {}]   ;;  %s776_s5 = inlined_call_operand.vmem [shape: bf16[128,32], index: 5, kind: input, shape index: {}]   ;;  %s777_s1 = inlined_call_operand.vmem [shape: f32[1,32], index: 1, kind: input, shape index: {}]   ;;  %s778_s2 = inlined_call_operand.vmem [shape: f32[1,32], index: 2, kind: input, shape index: {}]   ;;  %s779_s4 = inlined_call_operand.vmem [shape: f32[1,128], index: 4, kind: input, shape index: {}]   ;;  %s780_s6 = inlined_call_operand.vmem [shape: f32[1,32], index: 6, kind: input, shape index: {}]   ;;  %s781_s7 = inlined_call_operand.vmem [shape: f32[48,32], index: 7, kind: output, shape index: {}]  }
   0x1   :  { %v588_v0 = vld [vmem:[%s774_s0] sm:$0xff]  ;;  %v593_v1 = vld [vmem:[%s774_s0 + $0x10] sm:$0xff]  ;;  %v598_v2 = vld [vmem:[%s774_s0 + $0x8] sm:$0xff]  ;;  %447 = vmatprep.subr.bf16.mxu0 %v543_v42  ;;  %451 = vmatprep.mubr.msk.bf16.mxu0 %vm544_vm1, %v543_v42 }
   0x2   :  { %v36_v3 = vsel %vm35_vm0, %v588_v0, 0.0  ;;  %v42_v4 = vsel %vm35_vm0, %v593_v1, 0.0  ;;  %v607_v5 = vld [vmem:[%s774_s0 + $0x18] sm:$0xff]  ;;  %v39_v6 = vsel %vm35_vm0, %v598_v2, 0.0  ;;  %v616_v8 = vld [vmem:[%s774_s0 + $0x20] sm:$0xff]  ;;  %v621_v9 = vld [vmem:[%s774_s0 + $0x28] sm:$0xff]  ;;  %491 = vmatprep.subr.bf16.mxu1 %v543_v42  ;;  %483 = vmatprep.mubr.msk.bf16.mxu1 %vm544_vm1, %v543_v42 }
   0x3   :  { %37 = vadd.xlane.f32.xlu0 %v36_v3  ;;  %43 = vadd.xlane.f32.xlu1 %v42_v4  ;;  %v45_v7 = vsel %vm35_vm0, %v607_v5, 0.0  ;;  %v48_v10 = vsel %vm35_vm0, %v616_v8, 0.0  ;;  %v51_v11 = vsel %vm35_vm0, %v621_v9, 0.0  ;;  %v509_v43 = vld [vmem:[%s775_s3 + $0x8] sm:$0xff]   ;;  %v510_v44 = vld [vmem:[%s775_s3] sm:$0xff]   ;;  %v511_v45 = vld [vmem:[%s776_s5 + $0x38] sm:$0xff]  }
   0x4   :  { %448 = vmatpush3.bf16.msra.mxu0 %v509_v43  ;;  %499 = vmatpush3.bf16.msra.mxu1 %v511_v45  ;;  %v416_v43 = vld [vmem:[%s779_s4] ss:$0 sm:$0xff] }
   0x5   :  { %449 = vmatprep.subr.bf16.mxu0 %v543_v42  ;;  %492 = vmatprep.subr.bf16.mxu1 %v543_v42 }
   0x7   :  { %40 = vadd.xlane.f32.xlu0 %v39_v6  ;;  %46 = vadd.xlane.f32.xlu1 %v45_v7  ;;  %v414_v6 = vld [vmem:[%s777_s1] ss:$0 sm:$0xff] }
   0x8   :  { %450 = vmatpush3.bf16.msra.mxu0 %v510_v44 }
   0x9   :  { %463 = vmatprep.subr.bf16.mxu0 %v543_v42 }
   0xb   :  { %49 = vadd.xlane.f32.xlu0 %v48_v10  ;;  %52 = vadd.xlane.f32.xlu1 %v51_v11 }
  0x8c   :  { %v38_v12 = vpop.xlane.xlu0 %37  ;;  %v44_v13 = vpop.xlane.xlu1 %43 }
  0x8d   :  { %v55_v14 = vmul.f32 0.03125, %v38_v12  ;;  %v57_v15 = vmul.f32 0.03125, %v44_v13  ;;  %v415_v13 = vld [vmem:[%s778_s2] ss:$0 sm:$0xff] }
  0x8f   :  { %v628_v16 = vsub.f32 %v588_v0, %v55_v14  ;;  %v631_v17 = vsub.f32 %v593_v1, %v57_v15 }
  0x90   :  { %v41_v18 = vpop.xlane.xlu0 %40  ;;  %v47_v19 = vpop.xlane.xlu1 %46 }
  0x91   :  { %v56_v20 = vmul.f32 0.03125, %v41_v18  ;;  %v58_v21 = vmul.f32 0.03125, %v47_v19  ;;  %v67_v22 = vmul.f32 %v628_v16, %v628_v16  ;;  %v69_v23 = vmul.f32 %v631_v17, %v631_v17 }
  0x93   :  { %v638_v24 = vsub.f32 %v598_v2, %v56_v20  ;;  %v641_v25 = vsub.f32 %v607_v5, %v58_v21  ;;  %v73_v26 = vsel %vm35_vm0, %v67_v22, 0.0  ;;  %v79_v29 = vsel %vm35_vm0, %v69_v23, 0.0 }
  0x94   :  { %74 = vadd.xlane.f32.xlu0 %v73_v26  ;;  %v50_v27 = vpop.xlane.xlu0 %49  ;;  %v53_v28 = vpop.xlane.xlu1 %52 }
  0x95   :  { %v59_v30 = vmul.f32 0.03125, %v50_v27  ;;  %v60_v31 = vmul.f32 0.03125, %v53_v28  ;;  %v68_v32 = vmul.f32 %v638_v24, %v638_v24  ;;  %v70_v33 = vmul.f32 %v641_v25, %v641_v25 }
  0x97   :  { %v650_v34 = vsub.f32 %v616_v8, %v59_v30  ;;  %v653_v35 = vsub.f32 %v621_v9, %v60_v31  ;;  %v76_v36 = vsel %vm35_vm0, %v68_v32, 0.0  ;;  %v82_v37 = vsel %vm35_vm0, %v70_v33, 0.0 }
  0x98   :  { %80 = vadd.xlane.f32.xlu0 %v79_v29  ;;  %77 = vadd.xlane.f32.xlu1 %v76_v36 }
  0x99   :  { %v71_v38 = vmul.f32 %v650_v34, %v650_v34  ;;  %v72_v39 = vmul.f32 %v653_v35, %v653_v35 }
  0x9b   :  { %v85_v40 = vsel %vm35_vm0, %v71_v38, 0.0  ;;  %v88_v41 = vsel %vm35_vm0, %v72_v39, 0.0  ;;  %v515_v38 = vld [vmem:[%s776_s5 + $0x18] sm:$0xff]   ;;  %v516_v39 = vld [vmem:[%s776_s5 + $0x10] sm:$0xff]  }
  0x9c   :  { %83 = vadd.xlane.f32.xlu1 %v82_v37  ;;  %86 = vadd.xlane.f32.xlu0 %v85_v40  ;;  %v514_v37 = vld [vmem:[%s776_s5 + $0x20] sm:$0xff]   ;;  %v517_v40 = vld [vmem:[%s776_s5 + $0x8] sm:$0xff]  }
  0xa0   :  { %89 = vadd.xlane.f32.xlu1 %v88_v41  ;;  %v518_v41 = vld [vmem:[%s776_s5] sm:$0xff]  }
 0x11d   :  { %v75_v46 = vpop.xlane.xlu0 %74 }
 0x11e   :  { %v91_v47 = vmul.f32 0.03125, %v75_v46 }
 0x120   :  { %v97_v48 = vadd.f32 1e-06, %v91_v47 }
 0x121   :  { %v78_v49 = vpop.xlane.xlu1 %77  ;;  %v81_v50 = vpop.xlane.xlu0 %80 }
 0x122   :  { %519 = vrsqrt.f32 %v97_v48  ;;  %v92_v51 = vmul.f32 0.03125, %v78_v49  ;;  %v93_v52 = vmul.f32 0.03125, %v81_v50 }
 0x124   :  { %v98_v53 = vadd.f32 1e-06, %v92_v51  ;;  %v99_v54 = vadd.f32 1e-06, %v93_v52 }
 0x125   :  { %v84_v55 = vpop.xlane.xlu1 %83  ;;  %v87_v56 = vpop.xlane.xlu0 %86 }
 0x126   :  { %521 = vrsqrt.f32 %v98_v53  ;;  %v94_v57 = vmul.f32 0.03125, %v84_v55  ;;  %v95_v59 = vmul.f32 0.03125, %v87_v56 }
 0x127   :  { %523 = vrsqrt.f32 %v99_v54 }
 0x128   :  { %v100_v58 = vadd.f32 1e-06, %v94_v57  ;;  %v101_v62 = vadd.f32 1e-06, %v95_v59 }
 0x129   :  { %v90_v60 = vpop.xlane.xlu1 %89 }
 0x12a   :  { %525 = vrsqrt.f32 %v100_v58  ;;  %v96_v61 = vmul.f32 0.03125, %v90_v60 }
 0x12c   :  { %v102_v63 = vadd.f32 1e-06, %v96_v61 }
 0x12e   :  { %527 = vrsqrt.f32 %v102_v63 }
 0x12f   :  { %v520_v3 = vpop.eup %519  ;;  %529 = vrsqrt.f32 %v101_v62 }
 0x130   :  { %v109_v4 = vmul.f32 %v520_v3, %v628_v16 }
 0x132   :  { %v121_v11 = vmul.f32 %v414_v6, %v109_v4 }
 0x133   :  { %v522_v7 = vpop.eup %521 }
 0x134   :  { %v110_v10 = vmul.f32 %v522_v7, %v638_v24  ;;  %v524_v12 = vpop.eup %523  ;;  %v133_v18 = vadd.f32 %v415_v13, %v121_v11 }
 0x135   :  { %v111_v20 = vmul.f32 %v524_v12, %v631_v17 }
 0x136   :  { %v122_v14 = vmul.f32 %v414_v6, %v110_v10 }
 0x137   :  { %v526_v15 = vpop.eup %525  ;;  %v123_v24 = vmul.f32 %v414_v6, %v111_v20 }
 0x138   :  { %v134_v19 = vadd.f32 %v415_v13, %v122_v14  ;;  %v112_v16 = vmul.f32 %v526_v15, %v641_v25 }
 0x139   :  { %v135_v29 = vadd.f32 %v415_v13, %v123_v24 }
 0x13a   :  { %v139_v21 = vpack.c.bf16 %v134_v19, %v133_v18  ;;  %v124_v22 = vmul.f32 %v414_v6, %v112_v16 }
 0x13b   :  { %v528_v23 = vpop.eup %527 }
 0x13c   :  { %452 = vmatmul.mubr.msk.bf16.vlgmr.msra.gmra.mxu0 %vm35_vm0, %v139_v21  ;;  %v530_v26 = vpop.eup %529  ;;  %v136_v27 = vadd.f32 %v415_v13, %v124_v22  ;;  %v114_v28 = vmul.f32 %v528_v23, %v653_v35  ;;  %v513_v35 = vld [vmem:[%s776_s5 + $0x28] sm:$0xff]  }
 0x13d   :  { %455 = vmatprep.mubr.msk.bf16.mxu0 %vm544_vm1, %v543_v42  ;;  %464 = vmatpush3.bf16.msra.mxu0 %v511_v45  ;;  %v113_v17 = vmul.f32 %v530_v26, %v650_v34  ;;  %v512_v34 = vld [vmem:[%s776_s5 + $0x30] sm:$0xff]  }
 0x13e   :  { %465 = vmatprep.subr.bf16.mxu0 %v543_v42  ;;  %v140_v25 = vpack.c.bf16 %v136_v27, %v135_v29  ;;  %v126_v30 = vmul.f32 %v414_v6, %v114_v28  ;;  %500 = vmatpush3.bf16.msra.mxu1 %v512_v34 }
 0x13f   :  { %v125_v31 = vmul.f32 %v414_v6, %v113_v17  ;;  %493 = vmatprep.subr.bf16.mxu1 %v543_v42 }
 0x140   :  { %v138_v32 = vadd.f32 %v415_v13, %v126_v30 }
 0x141   :  { %v137_v33 = vadd.f32 %v415_v13, %v125_v31  ;;  %466 = vmatpush3.bf16.msra.mxu0 %v512_v34 }
 0x142   :  { %467 = vmatprep.subr.bf16.mxu0 %v543_v42  ;;  %501 = vmatpush3.bf16.msra.mxu1 %v513_v35 }
 0x143   :  { %v141_v36 = vpack.c.bf16 %v138_v32, %v137_v33  ;;  %494 = vmatprep.subr.bf16.mxu1 %v543_v42 }
 0x144   :  { %456 = vmatmul.mubr.msk.bf16.gmra.mxu0 %vm35_vm0, %v140_v25 }
 0x145   :  { %459 = vmatprep.mubr.msk.bf16.mxu0 %vm544_vm1, %v543_v42  ;;  %468 = vmatpush3.bf16.msra.mxu0 %v513_v35 }
 0x146   :  { %469 = vmatprep.subr.bf16.mxu0 %v543_v42  ;;  %502 = vmatpush3.bf16.msra.mxu1 %v514_v37 }
 0x147   :  { %495 = vmatprep.subr.bf16.mxu1 %v543_v42 }
 0x149   :  { %470 = vmatpush3.bf16.msra.mxu0 %v514_v37 }
 0x14a   :  { %471 = vmatprep.subr.bf16.mxu0 %v543_v42  ;;  %503 = vmatpush3.bf16.msra.mxu1 %v515_v38 }
 0x14b   :  { %496 = vmatprep.subr.bf16.mxu1 %v543_v42 }
 0x14c   :  { %460 = vmatmul.mubr.msk.bf16.gmra.mxu0 %vm35_vm0, %v141_v36 }
 0x14d   :  { %479 = vmatprep.mubr.msk.bf16.mxu0 %vm544_vm1, %v543_v42  ;;  %472 = vmatpush3.bf16.msra.mxu0 %v515_v38  ;;  %v430_v38 = vld [vmem:[%s780_s6] ss:$0 sm:$0xff] }
 0x14e   :  { %473 = vmatprep.subr.bf16.mxu0 %v543_v42  ;;  %504 = vmatpush3.bf16.msra.mxu1 %v516_v39 }
 0x14f   :  { %497 = vmatprep.subr.bf16.mxu1 %v543_v42 }
 0x151   :  { %474 = vmatpush3.bf16.msra.mxu0 %v516_v39 }
 0x152   :  { %475 = vmatprep.subr.bf16.mxu0 %v543_v42  ;;  %505 = vmatpush3.bf16.msra.mxu1 %v517_v40 }
 0x153   :  { %498 = vmatprep.subr.bf16.mxu1 %v543_v42 }
 0x155   :  { %476 = vmatpush3.bf16.msra.mxu0 %v517_v40 }
 0x156   :  { %477 = vmatprep.subr.bf16.mxu0 %v543_v42  ;;  %506 = vmatpush3.bf16.msra.mxu1 %v518_v41 }
 0x159   :  { %478 = vmatpush3.bf16.msra.mxu0 %v518_v41 }
 0x1fc   :  { %v208_v44 = vpop.f32.mrf.mxu0 }
 0x1fd   :  { %v209_v45 = vadd.f32 %v416_v43, %v208_v44 }
 0x1fe   :  { %v453_v46 = vpop.f32.mrf.mxu0 }
 0x1ff   :  { %v237_v47 = vmul.f32 0.70710677, %v209_v45  ;;  %v231_v12 = vmul.f32 0.5, %v209_v45 }
 0x200   :  { %v211_v48 = vpop.f32.mrf.mxu0 }
 0x201   :  { %531 = verf.f32 %v237_v47  ;;  %v212_v49 = vadd.f32 %v416_v43, %v211_v48 }
 0x202   :  { %v454_v50 = vpop.f32.mrf.mxu0 }
 0x203   :  { %v238_v51 = vmul.f32 0.70710677, %v212_v49  ;;  %v232_v13 = vmul.f32 0.5, %v212_v49 }
 0x204   :  { %v216_v52 = vpop.f32.mrf.mxu0 }
 0x205   :  { %533 = verf.f32 %v238_v51  ;;  %v217_v53 = vadd.f32 %v416_v43, %v216_v52 }
 0x206   :  { %v457_v54 = vpop.f32.mrf.mxu0 }
 0x207   :  { %v239_v55 = vmul.f32 0.70710677, %v217_v53  ;;  %v233_v23 = vmul.f32 0.5, %v217_v53 }
 0x208   :  { %v219_v56 = vpop.f32.mrf.mxu0 }
 0x209   :  { %535 = verf.f32 %v239_v55  ;;  %v220_v57 = vadd.f32 %v416_v43, %v219_v56 }
 0x20a   :  { %v458_v58 = vpop.f32.mrf.mxu0 }
 0x20b   :  { %v240_v59 = vmul.f32 0.70710677, %v220_v57  ;;  %v234_v24 = vmul.f32 0.5, %v220_v57 }
 0x20c   :  { %v224_v60 = vpop.f32.mrf.mxu0 }
 0x20d   :  { %537 = verf.f32 %v240_v59  ;;  %v225_v61 = vadd.f32 %v416_v43, %v224_v60 }
 0x20e   :  { %v532_v62 = vpop.eup %531  ;;  %v461_v63 = vpop.f32.mrf.mxu0 }
 0x20f   :  { %v241_v3 = vmul.f32 0.70710677, %v225_v61  ;;  %v249_v6 = vadd.f32 1.0, %v532_v62  ;;  %v235_v31 = vmul.f32 0.5, %v225_v61 }
 0x210   :  { %v227_v4 = vpop.f32.mrf.mxu0 }
 0x211   :  { %539 = verf.f32 %v241_v3  ;;  %v228_v7 = vadd.f32 %v416_v43, %v227_v4  ;;  %v255_v18 = vmul.f32 %v249_v6, %v231_v12 }
 0x212   :  { %v534_v10 = vpop.eup %533  ;;  %v462_v11 = vpop.f32.mrf.mxu0 }
 0x213   :  { %v250_v14 = vadd.f32 1.0, %v534_v10  ;;  %v242_v15 = vmul.f32 0.70710677, %v228_v7  ;;  %v236_v32 = vmul.f32 0.5, %v228_v7 }
 0x215   :  { %v256_v19 = vmul.f32 %v250_v14, %v232_v13  ;;  %541 = verf.f32 %v242_v15 }
 0x216   :  { %v536_v20 = vpop.eup %535 }
 0x217   :  { %v261_v16 = vpack.c.bf16 %v256_v19, %v255_v18  ;;  %v251_v21 = vadd.f32 1.0, %v536_v20 }
 0x219   :  { %480 = vmatmul.mubr.bf16.vlgmr.msra.gmra.mxu0 %v261_v16  ;;  %v257_v27 = vmul.f32 %v251_v21, %v233_v23 }
 0x21a   :  { %v538_v22 = vpop.eup %537 }
 0x21b   :  { %v252_v26 = vadd.f32 1.0, %v538_v22 }
 0x21d   :  { %v258_v28 = vmul.f32 %v252_v26, %v234_v24 }
 0x21e   :  { %v540_v29 = vpop.eup %539 }
 0x21f   :  { %v262_v17 = vpack.c.bf16 %v258_v28, %v257_v27  ;;  %v253_v25 = vadd.f32 1.0, %v540_v29 }
 0x221   :  { %484 = vmatmul.mubr.bf16.vlgmr.msra.gmra.mxu1 %v262_v17  ;;  %v259_v36 = vmul.f32 %v253_v25, %v235_v31 }
 0x222   :  { %v542_v30 = vpop.eup %541  ;;  %487 = vmatprep.mubr.msk.bf16.mxu1 %vm544_vm1, %v543_v42 }
 0x223   :  { %v254_v33 = vadd.f32 1.0, %v542_v30 }
 0x225   :  { %v260_v34 = vmul.f32 %v254_v33, %v236_v32 }
 0x227   :  { %v263_v35 = vpack.c.bf16 %v260_v34, %v259_v36 }
 0x229   :  { %488 = vmatmul.mubr.bf16.gmra.mxu1 %v263_v35 }
 0x2d9   :  { %v362_v37 = vpop.f32.mrf.mxu0 }
 0x2da   :  { %v385_v39 = vadd.f32 %v362_v37, %v588_v0 }
 0x2db   :  { %v481_v40 = vpop.f32.mrf.mxu0 }
 0x2dc   :  { %v398_v41 = vadd.f32 %v430_v38, %v385_v39 }
 0x2dd   :  { %v365_v43 = vpop.f32.mrf.mxu0 }
 0x2de   :  { %404 = vst.msk [vmem:[%s781_s7] sm:$0xff] %vm35_vm0, %v398_v41  ;;  %v386_v42 = vadd.f32 %v365_v43, %v598_v2 }
 0x2df   :  { %v482_v44 = vpop.f32.mrf.mxu0 }
 0x2e0   :  { %v399_v45 = vadd.f32 %v430_v38, %v386_v42 }
 0x2e1   :  { %v370_v46 = vpop.f32.mrf.mxu1 }
 0x2e2   :  { %405 = vst.msk [vmem:[%s781_s7 + $0x8] sm:$0xff] %vm35_vm0, %v399_v45  ;;  %v387_v0 = vadd.f32 %v370_v46, %v593_v1 }
 0x2e3   :  { %v485_v47 = vpop.f32.mrf.mxu1 }
 0x2e4   :  { %v400_v48 = vadd.f32 %v430_v38, %v387_v0 }
 0x2e5   :  { %v373_v49 = vpop.f32.mrf.mxu1 }
 0x2e6   :  { %406 = vst.msk [vmem:[%s781_s7 + $0x10] sm:$0xff] %vm35_vm0, %v400_v48  ;;  %v388_v2 = vadd.f32 %v373_v49, %v607_v5 }
 0x2e7   :  { %v486_v50 = vpop.f32.mrf.mxu1 }
 0x2e8   :  { %v401_v51 = vadd.f32 %v430_v38, %v388_v2 }
 0x2e9   :  { %v378_v52 = vpop.f32.mrf.mxu1 }
 0x2ea   :  { %407 = vst.msk [vmem:[%s781_s7 + $0x18] sm:$0xff] %vm35_vm0, %v401_v51  ;;  %v389_v1 = vadd.f32 %v378_v52, %v616_v8 }
 0x2eb   :  { %v489_v53 = vpop.f32.mrf.mxu1 }
 0x2ec   :  { %v402_v54 = vadd.f32 %v430_v38, %v389_v1 }
 0x2ed   :  { %v381_v55 = vpop.f32.mrf.mxu1 }
 0x2ee   :  { %408 = vst.msk [vmem:[%s781_s7 + $0x20] sm:$0xff] %vm35_vm0, %v402_v54  ;;  %v390_v5 = vadd.f32 %v381_v55, %v621_v9 }
 0x2ef   :  { %v490_v56 = vpop.f32.mrf.mxu1 }
 0x2f0   :  { %v403_v57 = vadd.f32 %v430_v38, %v390_v5 }
 0x2f2   :  { %409 = vst.msk [vmem:[%s781_s7 + $0x28] sm:$0xff] %vm35_vm0, %v403_v57 }

// kernel: vit_forward_pallas.11
= control target key start
LH: loop header
LB: loop body
LE: loop exit
PB: predicated region body
PF: predicated region fallthrough
CT: control target
= control target key end

     0   :  { %vm25_vm0 = vcmask 254976   ;;  %s237_s0 = inlined_call_operand.vmem [shape: f32[2,32], index: 0, kind: input, shape index: {}]   ;;  %s238_s1 = inlined_call_operand.vmem [shape: f32[1,32], index: 1, kind: input, shape index: {}]   ;;  %s239_s2 = inlined_call_operand.vmem [shape: f32[1,32], index: 2, kind: input, shape index: {}]   ;;  %s240_s3 = inlined_call_operand.vmem [shape: bf16[32,128], index: 3, kind: input, shape index: {}]   ;;  %s241_s4 = inlined_call_operand.vmem [shape: f32[1,128], index: 4, kind: input, shape index: {}]   ;;  %s242_s5 = inlined_call_operand.hbm [shape: f32[2,128], index: 5, kind: output, shape index: {}]  }
   0x1   :  { %v22_v0 = vld [vmem:[%s237_s0] sm:$0x3] }
   0x2   :  { %v26_v1 = vsel %vm25_vm0, %v22_v0, 0.0 }
   0x3   :  { %27 = vadd.xlane.f32.xlu0 %v26_v1 }
   0x4   :  { %10 = vsyncpa [#allocation3], 0  ;;  %v157_v7 = vld [vmem:[%s240_s3 + $0x8] sm:$0xff]   ;;  %v183_v8 = vmov 0.0   ;;  %vm184_vm1 = vmmov 0   ;;  %v158_v9 = vld [vmem:[%s240_s3] sm:$0xff]  }
   0x5   :  { %146 = vmatprep.subr.bf16.mxu0 %v183_v8  ;;  %150 = vmatprep.mubr.msk.bf16.mxu0 %vm184_vm1, %v183_v8  ;;  %v137_v14 = vld [vmem:[%s238_s1] ss:$0 sm:$0xff]  ;;  %vm78_vm2 = vcmask 261120   ;;  %s185_s28 = smov [#allocation2]  }
   0x6   :  { %147 = vmatpush3.bf16.msra.mxu0 %v157_v7  ;;  %v138_v16 = vld [vmem:[%s239_s2] ss:$0 sm:$0xff]  ;;  %s129_s29 = sshll.u32 %s185_s28, 4  ;;  %s130_s29 = int_to_ptr.vmem [resolvable:$true] %s129_s29 }
   0x7   :  { %148 = vmatprep.subr.bf16.mxu0 %v183_v8  ;;  %v139_v20 = vld [vmem:[%s241_s4] ss:$0 sm:$0xff]  ;;  %s161_s1 = scalar_lea.vmem %s130_s29, 32  ;;  %p166_p1 = scmp.lt.s32.totalorder %s130_s29, %s130_s29 }
   0x8   :  { %p162_p0 = scmp.ne.s32.totalorder %s130_s29, %s161_s1  ;;  %p167_p2 = scmp.lt.s32.totalorder %s161_s1, %s161_s1 }
   0xa   :  { %149 = vmatpush3.bf16.msra.mxu0 %v158_v9  ;;  %p168_p3 = por %p167_p2, %p166_p1 }
   0xc   :  { %p169_p4 = pnand %p168_p3, %p162_p0 }
  0x8c   :  { %v28_v2 = vpop.xlane.xlu0 %27 }
  0x8d   :  { %v30_v3 = vmul.f32 0.03125, %v28_v2 }
  0x8f   :  { %v31_v4 = vsub.f32 %v22_v0, %v30_v3 }
  0x91   :  { %v32_v5 = vmul.f32 %v31_v4, %v31_v4 }
  0x93   :  { %v33_v6 = vsel %vm25_vm0, %v32_v5, 0.0 }
  0x94   :  { %34 = vadd.xlane.f32.xlu0 %v33_v6 }
 0x11d   :  { %v35_v10 = vpop.xlane.xlu0 %34 }
 0x11e   :  { %v36_v11 = vmul.f32 0.03125, %v35_v10 }
 0x120   :  { %v37_v12 = vadd.f32 1e-06, %v36_v11 }
 0x122   :  { %159 = vrsqrt.f32 %v37_v12 }
 0x12f   :  { %v160_v13 = vpop.eup %159 }
 0x130   :  { %v39_v15 = vmul.f32 %v160_v13, %v31_v4 }
 0x132   :  { %v46_v17 = vmul.f32 %v137_v14, %v39_v15 }
 0x134   :  { %v53_v18 = vadd.f32 %v138_v16, %v46_v17 }
 0x136   :  { %v54_v19 = vpack.c.bf16 %v53_v18, %v53_v18 }
 0x138   :  { %151 = vmatmul.mubr.msk.bf16.vlgmr.msra.gmra.mxu0 %vm78_vm2, %v54_v19 }
 0x1f8   :  { %v116_v21 = vpop.f32.mrf.mxu0 }
 0x1f9   :  { %v117_v22 = vadd.f32 %v139_v20, %v116_v21 }
 0x1fa   :  { %v152_v23 = vpop.f32.mrf.mxu0 }
 0x1fb   :  { %122 = vst [vmem:[#allocation2] sm:$0x3] %v117_v22 }
 0x1fc   :  { %v119_v24 = vpop.f32.mrf.mxu0 }
 0x1fd   :  { %172 = shalt.err (!%p169_p4)
}
 0x1fe   :  { %132 = dma.vmem_to_hbm [thread:$0]  %s130_s29, 32, %s242_s5, [#allocation3]   ;;  %v153_v25 = vpop.f32.mrf.mxu0 }
 0x1ff   :  { %181 = dma.done.wait [#allocation3], 32  }
 0x200   :  { %182 = vsyncadd [#allocation3], 4294967264 }
 0x201   :  { %136 = vsyncpa [#allocation3], 1 }

</bundles_post_ra>
